<compile_context>
chip_gen: v5e
topology: v5e:2x2
jax: 0.10.0
libtpu: 0.0.40
codegen_flags: <defaults>
</compile_context>

<pallas_src>
import functools
import math

import jax
import jax.numpy as jnp
from jax import lax
from jax.experimental import pallas as pl
from jax.experimental.pallas import tpu as pltpu


# ----------------------------------------------------------------------------
# Row-tile selection: biggest tile that divides R, multiple of 8, capped so the
# double-buffered (TR, D)/(TR, N) blocks stay far below v7x's 64 MiB VMEM.
# ----------------------------------------------------------------------------
def _pick_row_tile(rows):
    for t in (256, 128, 64, 32, 16, 8):
        if rows % t == 0:
            return t
    return rows  # full-dim escape hatch (block == array extent)


# ----------------------------------------------------------------------------
# Kernel 1: fused  LayerNorm(x) @ W + b  (optionally ReLU)
#   - LayerNorm matches torch: unbiased std (ddof=1), eps added to std.
# ----------------------------------------------------------------------------
def _ln_matmul_bias_kernel(x_ref, g_ref, b_ref, w_ref, bias_ref, o_ref, *,
                           eps, relu):
    x = x_ref[...].astype(jnp.float32)                       # [TR, D]
    d = x.shape[-1]
    mean = jnp.mean(x, axis=-1, keepdims=True)                # [TR, 1]
    diff = x - mean
    var = jnp.sum(diff * diff, axis=-1, keepdims=True) / jnp.float32(d - 1)
    std = jnp.sqrt(var)
    inv = pl.reciprocal(std + jnp.float32(eps), approx=False)  # EUP, cheap
    normed = (g_ref[...].astype(jnp.float32) * (diff * inv)
              + b_ref[...].astype(jnp.float32))               # [TR, D]
    y = jnp.dot(normed.astype(w_ref.dtype), w_ref[...],
                preferred_element_type=jnp.float32)           # [TR, N]
    y = y + bias_ref[...].astype(jnp.float32)
    if relu:
        y = jnp.maximum(y, 0.0)
    o_ref[...] = y.astype(o_ref.dtype)


def ln_matmul_bias(x2d, gamma, beta, w, bias, *, eps=1e-6, relu=False):
    """[R, D] -> [R, N]:  (optional ReLU of)  LayerNorm(x) @ w + bias."""
    R, D = x2d.shape
    N = w.shape[1]
    TR = _pick_row_tile(R)
    # TODO(synk): for very large D / N, add a K-axis grid with a VMEM f32
    # accumulator; at these sizes the full weight block fits VMEM comfortably.
    return pl.pallas_call(
        functools.partial(_ln_matmul_bias_kernel, eps=eps, relu=relu),
        out_shape=jax.ShapeDtypeStruct((R, N), x2d.dtype),
        grid=(R // TR,),
        in_specs=[
            pl.BlockSpec((TR, D), lambda i: (i, 0)),
            pl.BlockSpec((1, D), lambda i: (0, 0)),
            pl.BlockSpec((1, D), lambda i: (0, 0)),
            pl.BlockSpec((D, N), lambda i: (0, 0)),
            pl.BlockSpec((1, N), lambda i: (0, 0)),
        ],
        out_specs=pl.BlockSpec((TR, N), lambda i: (i, 0)),
        compiler_params=pltpu.CompilerParams(
            dimension_semantics=("parallel",)),
    )(x2d, gamma.reshape(1, D), beta.reshape(1, D), w, bias.reshape(1, N))


# ----------------------------------------------------------------------------
# Kernel 2: fused  residual + h @ W + b   (the sublayer epilogue)
# ----------------------------------------------------------------------------
def _matmul_bias_residual_kernel(h_ref, w_ref, bias_ref, res_ref, o_ref):
    y = jnp.dot(h_ref[...].astype(w_ref.dtype), w_ref[...],
                preferred_element_type=jnp.float32)            # [TR, N]
    y = y + bias_ref[...].astype(jnp.float32) + res_ref[...].astype(jnp.float32)
    o_ref[...] = y.astype(o_ref.dtype)


def matmul_bias_residual(h2d, w, bias, res2d):
    """[R, K] @ [K, N] + bias + residual  ->  [R, N]."""
    R, K = h2d.shape
    N = w.shape[1]
    TR = _pick_row_tile(R)
    return pl.pallas_call(
        _matmul_bias_residual_kernel,
        out_shape=jax.ShapeDtypeStruct((R, N), res2d.dtype),
        grid=(R // TR,),
        in_specs=[
            pl.BlockSpec((TR, K), lambda i: (i, 0)),
            pl.BlockSpec((K, N), lambda i: (0, 0)),
            pl.BlockSpec((1, N), lambda i: (0, 0)),
            pl.BlockSpec((TR, N), lambda i: (i, 0)),
        ],
        out_specs=pl.BlockSpec((TR, N), lambda i: (i, 0)),
        # Reuse the residual stream's HBM buffer for the output.
        input_output_aliases={3: 0},
        compiler_params=pltpu.CompilerParams(
            dimension_semantics=("parallel",)),
    )(h2d, w, bias.reshape(1, N), res2d)


# ----------------------------------------------------------------------------
# Kernel 3: scaled-dot-product attention, one (batch, head) per grid step.
# ----------------------------------------------------------------------------
def _attention_kernel(q_ref, k_ref, v_ref, m_ref, o_ref, *, scale):
    q = q_ref[0].astype(jnp.float32)                           # [S, dk]
    k = k_ref[0].astype(jnp.float32)                           # [S, dk]
    v = v_ref[0].astype(jnp.float32)                           # [S, dk]
    # scores[i, j] = q[i] . k[j]  (contraction on dk, no explicit transpose)
    s = lax.dot_general(q, k, (((1,), (1,)), ((), ())),
                        preferred_element_type=jnp.float32) * jnp.float32(scale)
    mask = m_ref[...]                                          # [1, S]
    s = jnp.where(mask == 0, jnp.float32(-1e9), s)
    s = s - jnp.max(s, axis=-1, keepdims=True)
    p = jnp.exp(s)
    denom = jnp.sum(p, axis=-1, keepdims=True)
    p = p * pl.reciprocal(denom, approx=False)
    o = jnp.dot(p, v, preferred_element_type=jnp.float32)      # [S, dk]
    o_ref[0] = o.astype(o_ref.dtype)


def attention_pallas(q, k, v, mask, *, scale):
    """q/k/v: [B*H, S, dk]; mask: [1, S] (1 = keep, 0 = mask out)."""
    BH, S, dk = q.shape
    # TODO(synk): for long sequences, replace with a flash-style tiled kernel
    # (online softmax over KV tiles); whole-sequence blocks are fine at S=8.
    return pl.pallas_call(
        functools.partial(_attention_kernel, scale=scale),
        out_shape=jax.ShapeDtypeStruct((BH, S, dk), q.dtype),
        grid=(BH,),
        in_specs=[
            pl.BlockSpec((1, S, dk), lambda i: (i, 0, 0)),
            pl.BlockSpec((1, S, dk), lambda i: (i, 0, 0)),
            pl.BlockSpec((1, S, dk), lambda i: (i, 0, 0)),
            pl.BlockSpec((1, S), lambda i: (0, 0)),
        ],
        out_specs=pl.BlockSpec((1, S, dk), lambda i: (i, 0, 0)),
        compiler_params=pltpu.CompilerParams(
            dimension_semantics=("parallel",)),
    )(q, k, v, mask)


# ----------------------------------------------------------------------------
# EncoderLayer forward (pre-norm):  x -> x + MHA(LN1(x)) -> + FFN(LN2(.))
# ----------------------------------------------------------------------------
def encoder_layer(src_embed, src_mask, params, *, num_heads, eps=1e-6):
    B, S, D = src_embed.shape
    H = num_heads
    dk = D // H
    R = B * S
    x2d = src_embed.reshape(R, D)

    # --- Sublayer 0: self-attention (LN fused into QKV matmul, residual fused
    #     into the output projection) ---
    qkv = ln_matmul_bias(x2d, params["ln1_g"], params["ln1_b"],
                         params["w_qkv"], params["b_qkv"], eps=eps)   # [R, 3D]
    qkv = qkv.reshape(B, S, 3, H, dk)
    q = qkv[:, :, 0].transpose(0, 2, 1, 3).reshape(B * H, S, dk)
    k = qkv[:, :, 1].transpose(0, 2, 1, 3).reshape(B * H, S, dk)
    v = qkv[:, :, 2].transpose(0, 2, 1, 3).reshape(B * H, S, dk)
    ctx = attention_pallas(q, k, v, src_mask, scale=1.0 / math.sqrt(dk))
    ctx = ctx.reshape(B, H, S, dk).transpose(0, 2, 1, 3).reshape(R, D)
    attn_out = matmul_bias_residual(ctx, params["w_o"], params["b_o"], x2d)

    # --- Sublayer 1: feed-forward (LN fused into FF1+ReLU, residual fused
    #     into FF2) ---
    h = ln_matmul_bias(attn_out, params["ln2_g"], params["ln2_b"],
                       params["w_ff1"], params["b_ff1"], eps=eps, relu=True)
    out2d = matmul_bias_residual(h, params["w_ff2"], params["b_ff2"], attn_out)
    return out2d.reshape(B, S, D)


# ----------------------------------------------------------------------------
# Pure-JAX reference with torch-exact LayerNorm semantics.
# ----------------------------------------------------------------------------
def encoder_layer_reference(src_embed, src_mask, params, *, num_heads, eps=1e-6):
    B, S, D = src_embed.shape
    H = num_heads
    dk = D // H

    def layer_norm(x, g, b):
        mean = x.mean(-1, keepdims=True)
        var = ((x - mean) ** 2).sum(-1, keepdims=True) / (D - 1)  # unbiased
        std = jnp.sqrt(var)
        return g * (x - mean) / (std + eps) + b

    def self_attn(x):
        qkv = x @ params["w_qkv"] + params["b_qkv"]
        q, k, v = jnp.split(qkv, 3, axis=-1)

        def split_heads(t):
            return t.reshape(B, S, H, dk).transpose(0, 2, 1, 3)

        q, k, v = split_heads(q), split_heads(k), split_heads(v)
        scores = jnp.einsum("bhqd,bhkd->bhqk", q, k) / math.sqrt(dk)
        scores = jnp.where(src_mask[None, None, :, :] == 0, -1e9, scores)
        p = jax.nn.softmax(scores, axis=-1)
        ctx = jnp.einsum("bhqk,bhkd->bhqd", p, v)
        ctx = ctx.transpose(0, 2, 1, 3).reshape(B, S, D)
        return ctx @ params["w_o"] + params["b_o"]

    def feed_forward(x):
        h = jnp.maximum(x @ params["w_ff1"] + params["b_ff1"], 0.0)
        return h @ params["w_ff2"] + params["b_ff2"]

    a = src_embed + self_attn(layer_norm(src_embed,
                                         params["ln1_g"], params["ln1_b"]))
    return a + feed_forward(layer_norm(a, params["ln2_g"], params["ln2_b"]))


# ----------------------------------------------------------------------------
if __name__ == "__main__":
    batch, seq, dim_model, num_heads, dim_ff = 2, 8, 128, 4, 256  # lane-dense D

    key = jax.random.PRNGKey(0)
    keys = jax.random.split(key, 8)
    x = jax.random.normal(keys[0], (batch, seq, dim_model), dtype=jnp.float32)
    # src_mask = ones(1, 1, SEQ_LEN) in the original -> keep everything.
    src_mask = jnp.ones((1, seq), dtype=jnp.float32)

    params = {
        # LayerNorm params (ones / zeros, as in the module __init__).
        "ln1_g": jnp.ones((dim_model,), jnp.float32),
        "ln1_b": jnp.zeros((dim_model,), jnp.float32),
        "ln2_g": jnp.ones((dim_model,), jnp.float32),
        "ln2_b": jnp.zeros((dim_model,), jnp.float32),
        # Multi-headed self-attention (fused QKV projection + output proj).
        "w_qkv": jax.random.normal(keys[1], (dim_model, 3 * dim_model),
                                   jnp.float32) * 0.05,
        "b_qkv": jax.random.normal(keys[2], (3 * dim_model,), jnp.float32) * 0.01,
        "w_o": jax.random.normal(keys[3], (dim_model, dim_model),
                                 jnp.float32) * 0.05,
        "b_o": jax.random.normal(keys[4], (dim_model,), jnp.float32) * 0.01,
        # Position-wise feed forward (Linear -> ReLU -> Linear).
        "w_ff1": jax.random.normal(keys[5], (dim_model, dim_ff),
                                   jnp.float32) * 0.05,
        "b_ff1": jax.random.normal(keys[6], (dim_ff,), jnp.float32) * 0.01,
        "w_ff2": jax.random.normal(keys[7], (dim_ff, dim_model),
                                   jnp.float32) * 0.05,
        "b_ff2": jnp.zeros((dim_model,), jnp.float32),
    }

    run = jax.jit(functools.partial(encoder_layer, num_heads=num_heads, eps=1e-6))
    out = run(x, src_mask, params)
    out = jax.block_until_ready(out)

    ref = encoder_layer_reference(x, src_mask, params,
                                  num_heads=num_heads, eps=1e-6)

    assert out.shape == x.shape and out.dtype == x.dtype
    # Tolerance covers f32 MXU multi-pass vs. XLA matmul rounding differences.
    assert jnp.allclose(out, ref, atol=1e-3, rtol=1e-3)
    print("KERNEL_OK")
</pallas_src>

<mosaic_0001>
module attributes {stable_mosaic.version = 11 : i64} {
  func.func @_ln_matmul_bias_kernel(%arg0: i32, %arg1: memref<16x128xf32, #tpu.memory_space<vmem>>, %arg2: memref<1x128xf32, #tpu.memory_space<vmem>>, %arg3: memref<1x128xf32, #tpu.memory_space<vmem>>, %arg4: memref<128x384xf32, #tpu.memory_space<vmem>>, %arg5: memref<1x384xf32, #tpu.memory_space<vmem>>, %arg6: memref<16x384xf32, #tpu.memory_space<vmem>>) attributes {dimension_semantics = [#tpu.dimension_semantics<parallel>], iteration_bounds = array<i64: 1>, scalar_prefetch = 0 : i64, scratch_operands = 0 : i64, tpu.core_type = #tpu.core_type<tc>, window_params = [{transform_indices = @transform_0, window_bounds = array<i64: 16, 128>}, {pipeline_mode = #tpu.pipeline_mode<synchronous>, transform_indices = @transform_1, window_bounds = array<i64: 1, 128>}, {pipeline_mode = #tpu.pipeline_mode<synchronous>, transform_indices = @transform_2, window_bounds = array<i64: 1, 128>}, {pipeline_mode = #tpu.pipeline_mode<synchronous>, transform_indices = @transform_3, window_bounds = array<i64: 128, 384>}, {pipeline_mode = #tpu.pipeline_mode<synchronous>, transform_indices = @transform_4, window_bounds = array<i64: 1, 384>}, {transform_indices = @transform_5, window_bounds = array<i64: 16, 384>}]} {
    %c0 = arith.constant 0 : index
    %c0_0 = arith.constant 0 : index
    %0 = vector.load %arg1[%c0, %c0_0] : memref<16x128xf32, #tpu.memory_space<vmem>>, vector<16x128xf32>
    %cst = arith.constant dense<0.000000e+00> : vector<16xf32>
    %1 = vector.multi_reduction <add>, %0, %cst [1] : vector<16x128xf32> to vector<16xf32>
    %2 = vector.shape_cast %1 : vector<16xf32> to vector<16x1xf32>
    %cst_1 = arith.constant 1.280000e+02 : f32
    %3 = vector.broadcast %cst_1 : f32 to vector<16x1xf32>
    %4 = arith.divf %2, %3 : vector<16x1xf32>
    %5 = vector.broadcast %4 : vector<16x1xf32> to vector<16x128xf32>
    %6 = arith.subf %0, %5 : vector<16x128xf32>
    %7 = arith.mulf %6, %6 : vector<16x128xf32>
    %cst_2 = arith.constant dense<0.000000e+00> : vector<16xf32>
    %8 = vector.multi_reduction <add>, %7, %cst_2 [1] : vector<16x128xf32> to vector<16xf32>
    %9 = vector.shape_cast %8 : vector<16xf32> to vector<16x1xf32>
    %cst_3 = arith.constant 1.270000e+02 : f32
    %10 = vector.broadcast %cst_3 : f32 to vector<16x1xf32>
    %11 = arith.divf %9, %10 : vector<16x1xf32>
    %12 = math.sqrt %11 : vector<16x1xf32>
    %cst_4 = arith.constant 9.99999997E-7 : f32
    %13 = vector.broadcast %cst_4 : f32 to vector<16x1xf32>
    %14 = arith.addf %12, %13 : vector<16x1xf32>
    %15 = tpu.reciprocal %14 : vector<16x1xf32> -> vector<16x1xf32>
    %c0_5 = arith.constant 0 : index
    %c0_6 = arith.constant 0 : index
    %16 = vector.load %arg2[%c0_5, %c0_6] : memref<1x128xf32, #tpu.memory_space<vmem>>, vector<1x128xf32>
    %17 = vector.broadcast %15 : vector<16x1xf32> to vector<16x128xf32>
    %18 = arith.mulf %6, %17 : vector<16x128xf32>
    %19 = vector.broadcast %16 : vector<1x128xf32> to vector<16x128xf32>
    %20 = arith.mulf %19, %18 : vector<16x128xf32>
    %c0_7 = arith.constant 0 : index
    %c0_8 = arith.constant 0 : index
    %21 = vector.load %arg3[%c0_7, %c0_8] : memref<1x128xf32, #tpu.memory_space<vmem>>, vector<1x128xf32>
    %22 = vector.broadcast %21 : vector<1x128xf32> to vector<16x128xf32>
    %23 = arith.addf %20, %22 : vector<16x128xf32>
    %c0_9 = arith.constant 0 : index
    %c0_10 = arith.constant 0 : index
    %24 = vector.load %arg4[%c0_9, %c0_10] : memref<128x384xf32, #tpu.memory_space<vmem>>, vector<128x384xf32>
    %cst_11 = arith.constant dense<0.000000e+00> : vector<16x384xf32>
    %25 = tpu.matmul %23, %24, %cst_11 {dimension_numbers = #tpu.dot_dimension_numbers<[1], [0], [0], [1], [0, 0, 1, 1], [], []>} : vector<16x128xf32>, vector<128x384xf32>, vector<16x384xf32> -> vector<16x384xf32>
    %c0_12 = arith.constant 0 : index
    %c0_13 = arith.constant 0 : index
    %26 = vector.load %arg5[%c0_12, %c0_13] : memref<1x384xf32, #tpu.memory_space<vmem>>, vector<1x384xf32>
    %27 = vector.broadcast %26 : vector<1x384xf32> to vector<16x384xf32>
    %28 = arith.addf %25, %27 : vector<16x384xf32>
    %c0_14 = arith.constant 0 : index
    %c0_15 = arith.constant 0 : index
    %29 = vector.load %arg6[%c0_14, %c0_15] : memref<16x384xf32, #tpu.memory_space<vmem>>, vector<16x384xf32>
    tpu.vector_store %arg6[%c0_14, %c0_15], %28 {strides = array<i32>} : memref<16x384xf32, #tpu.memory_space<vmem>>, vector<16x384xf32>,
    return
  }
  func.func @transform_0(%arg0: i32) -> (i32, i32) {
    %c0_i32 = arith.constant 0 : i32
    %c0_i32_0 = arith.constant 0 : i32
    return %arg0, %c0_i32 : i32, i32
  }
  func.func @transform_1(%arg0: i32) -> (i32, i32) {
    %c0_i32 = arith.constant 0 : i32
    %c0_i32_0 = arith.constant 0 : i32
    %c0_i32_1 = arith.constant 0 : i32
    return %c0_i32, %c0_i32_0 : i32, i32
  }
  func.func @transform_2(%arg0: i32) -> (i32, i32) {
    %c0_i32 = arith.constant 0 : i32
    %c0_i32_0 = arith.constant 0 : i32
    %c0_i32_1 = arith.constant 0 : i32
    return %c0_i32, %c0_i32_0 : i32, i32
  }
  func.func @transform_3(%arg0: i32) -> (i32, i32) {
    %c0_i32 = arith.constant 0 : i32
    %c0_i32_0 = arith.constant 0 : i32
    %c0_i32_1 = arith.constant 0 : i32
    return %c0_i32, %c0_i32_0 : i32, i32
  }
  func.func @transform_4(%arg0: i32) -> (i32, i32) {
    %c0_i32 = arith.constant 0 : i32
    %c0_i32_0 = arith.constant 0 : i32
    %c0_i32_1 = arith.constant 0 : i32
    return %c0_i32, %c0_i32_0 : i32, i32
  }
  func.func @transform_5(%arg0: i32) -> (i32, i32) {
    %c0_i32 = arith.constant 0 : i32
    %c0_i32_0 = arith.constant 0 : i32
    return %arg0, %c0_i32 : i32, i32
  }
}

module attributes {stable_mosaic.version = 11 : i64} {
  func.func @_attention_kernel(%arg0: i32, %arg1: memref<1x8x32xf32, #tpu.memory_space<vmem>>, %arg2: memref<1x8x32xf32, #tpu.memory_space<vmem>>, %arg3: memref<1x8x32xf32, #tpu.memory_space<vmem>>, %arg4: memref<1x8xf32, #tpu.memory_space<vmem>>, %arg5: memref<1x8x32xf32, #tpu.memory_space<vmem>>) attributes {dimension_semantics = [#tpu.dimension_semantics<parallel>], iteration_bounds = array<i64: 8>, scalar_prefetch = 0 : i64, scratch_operands = 0 : i64, tpu.core_type = #tpu.core_type<tc>, window_params = [{transform_indices = @transform_0, window_bounds = array<i64: 1, 8, 32>}, {transform_indices = @transform_1, window_bounds = array<i64: 1, 8, 32>}, {transform_indices = @transform_2, window_bounds = array<i64: 1, 8, 32>}, {pipeline_mode = #tpu.pipeline_mode<synchronous>, transform_indices = @transform_3, window_bounds = array<i64: 1, 8>}, {transform_indices = @transform_4, window_bounds = array<i64: 1, 8, 32>}]} {
    %c0 = arith.constant 0 : index
    %c0_0 = arith.constant 0 : index
    %c0_1 = arith.constant 0 : index
    %0 = vector.load %arg1[%c0, %c0_0, %c0_1] : memref<1x8x32xf32, #tpu.memory_space<vmem>>, vector<1x8x32xf32>
    %1 = vector.shape_cast %0 : vector<1x8x32xf32> to vector<8x32xf32>
    %c0_2 = arith.constant 0 : index
    %c0_3 = arith.constant 0 : index
    %c0_4 = arith.constant 0 : index
    %2 = vector.load %arg2[%c0_2, %c0_3, %c0_4] : memref<1x8x32xf32, #tpu.memory_space<vmem>>, vector<1x8x32xf32>
    %3 = vector.shape_cast %2 : vector<1x8x32xf32> to vector<8x32xf32>
    %c0_5 = arith.constant 0 : index
    %c0_6 = arith.constant 0 : index
    %c0_7 = arith.constant 0 : index
    %4 = vector.load %arg3[%c0_5, %c0_6, %c0_7] : memref<1x8x32xf32, #tpu.memory_space<vmem>>, vector<1x8x32xf32>
    %5 = vector.shape_cast %4 : vector<1x8x32xf32> to vector<8x32xf32>
    %cst = arith.constant dense<0.000000e+00> : vector<8x8xf32>
    %6 = tpu.matmul %1, %3, %cst {dimension_numbers = #tpu.dot_dimension_numbers<[1], [1], [0], [0], [0, 0, 1, 0], [], []>} : vector<8x32xf32>, vector<8x32xf32>, vector<8x8xf32> -> vector<8x8xf32>
    %cst_8 = arith.constant 0.176776692 : f32
    %7 = vector.broadcast %cst_8 : f32 to vector<8x8xf32>
    %8 = arith.mulf %6, %7 : vector<8x8xf32>
    %c0_9 = arith.constant 0 : index
    %c0_10 = arith.constant 0 : index
    %9 = vector.load %arg4[%c0_9, %c0_10] : memref<1x8xf32, #tpu.memory_space<vmem>>, vector<1x8xf32>
    %cst_11 = arith.constant 0.000000e+00 : f32
    %10 = vector.broadcast %cst_11 : f32 to vector<1x8xf32>
    %11 = arith.cmpf oeq, %9, %10 : vector<1x8xf32>
    %cst_12 = arith.constant -1.000000e+09 : f32
    %12 = vector.shape_cast %11 : vector<1x8xi1> to vector<1x8xi1>
    %13 = vector.broadcast %12 : vector<1x8xi1> to vector<8x8xi1>
    %14 = vector.broadcast %cst_12 : f32 to vector<8x8xf32>
    %15 = arith.select %13, %14, %8 : vector<8x8xi1>, vector<8x8xf32>
    %cst_13 = arith.constant dense<0xFF800000> : vector<8xf32>
    %16 = vector.multi_reduction <maximumf>, %15, %cst_13 [1] : vector<8x8xf32> to vector<8xf32>
    %17 = vector.shape_cast %16 : vector<8xf32> to vector<8x1xf32>
    %18 = vector.broadcast %17 : vector<8x1xf32> to vector<8x8xf32>
    %19 = arith.subf %15, %18 : vector<8x8xf32>
    %20 = math.exp %19 : vector<8x8xf32>
    %cst_14 = arith.constant dense<0.000000e+00> : vector<8xf32>
    %21 = vector.multi_reduction <add>, %20, %cst_14 [1] : vector<8x8xf32> to vector<8xf32>
    %22 = vector.shape_cast %21 : vector<8xf32> to vector<8x1xf32>
    %23 = tpu.reciprocal %22 : vector<8x1xf32> -> vector<8x1xf32>
    %24 = vector.broadcast %23 : vector<8x1xf32> to vector<8x8xf32>
    %25 = arith.mulf %20, %24 : vector<8x8xf32>
    %cst_15 = arith.constant dense<0.000000e+00> : vector<8x32xf32>
    %26 = tpu.matmul %25, %5, %cst_15 {dimension_numbers = #tpu.dot_dimension_numbers<[1], [0], [0], [1], [0, 0, 1, 1], [], []>} : vector<8x8xf32>, vector<8x32xf32>, vector<8x32xf32> -> vector<8x32xf32>
    %c0_16 = arith.constant 0 : index
    %c0_17 = arith.constant 0 : index
    %c0_18 = arith.constant 0 : index
    %27 = vector.load %arg5[%c0_16, %c0_17, %c0_18] : memref<1x8x32xf32, #tpu.memory_space<vmem>>, vector<1x8x32xf32>
    %28 = vector.shape_cast %27 : vector<1x8x32xf32> to vector<8x32xf32>
    %29 = vector.shape_cast %26 : vector<8x32xf32> to vector<1x8x32xf32>
    tpu.vector_store %arg5[%c0_16, %c0_17, %c0_18], %29 {strides = array<i32>} : memref<1x8x32xf32, #tpu.memory_space<vmem>>, vector<1x8x32xf32>,
    return
  }
  func.func @transform_0(%arg0: i32) -> (i32, i32, i32) {
    %c0_i32 = arith.constant 0 : i32
    %c0_i32_0 = arith.constant 0 : i32
    %c0_i32_1 = arith.constant 0 : i32
    return %arg0, %c0_i32, %c0_i32_0 : i32, i32, i32
  }
  func.func @transform_1(%arg0: i32) -> (i32, i32, i32) {
    %c0_i32 = arith.constant 0 : i32
    %c0_i32_0 = arith.constant 0 : i32
    %c0_i32_1 = arith.constant 0 : i32
    return %arg0, %c0_i32, %c0_i32_0 : i32, i32, i32
  }
  func.func @transform_2(%arg0: i32) -> (i32, i32, i32) {
    %c0_i32 = arith.constant 0 : i32
    %c0_i32_0 = arith.constant 0 : i32
    %c0_i32_1 = arith.constant 0 : i32
    return %arg0, %c0_i32, %c0_i32_0 : i32, i32, i32
  }
  func.func @transform_3(%arg0: i32) -> (i32, i32) {
    %c0_i32 = arith.constant 0 : i32
    %c0_i32_0 = arith.constant 0 : i32
    %c0_i32_1 = arith.constant 0 : i32
    return %c0_i32, %c0_i32_0 : i32, i32
  }
  func.func @transform_4(%arg0: i32) -> (i32, i32, i32) {
    %c0_i32 = arith.constant 0 : i32
    %c0_i32_0 = arith.constant 0 : i32
    %c0_i32_1 = arith.constant 0 : i32
    return %arg0, %c0_i32, %c0_i32_0 : i32, i32, i32
  }
}

module attributes {stable_mosaic.version = 11 : i64} {
  func.func @_matmul_bias_residual_kernel(%arg0: i32, %arg1: memref<16x128xf32, #tpu.memory_space<vmem>>, %arg2: memref<128x128xf32, #tpu.memory_space<vmem>>, %arg3: memref<1x128xf32, #tpu.memory_space<vmem>>, %arg4: memref<16x128xf32, #tpu.memory_space<vmem>>, %arg5: memref<16x128xf32, #tpu.memory_space<vmem>>) attributes {dimension_semantics = [#tpu.dimension_semantics<parallel>], iteration_bounds = array<i64: 1>, scalar_prefetch = 0 : i64, scratch_operands = 0 : i64, tpu.core_type = #tpu.core_type<tc>, window_params = [{transform_indices = @transform_0, window_bounds = array<i64: 16, 128>}, {pipeline_mode = #tpu.pipeline_mode<synchronous>, transform_indices = @transform_1, window_bounds = array<i64: 128, 128>}, {pipeline_mode = #tpu.pipeline_mode<synchronous>, transform_indices = @transform_2, window_bounds = array<i64: 1, 128>}, {transform_indices = @transform_3, window_bounds = array<i64: 16, 128>}, {transform_indices = @transform_4, window_bounds = array<i64: 16, 128>}]} {
    %c0 = arith.constant 0 : index
    %c0_0 = arith.constant 0 : index
    %0 = vector.load %arg1[%c0, %c0_0] : memref<16x128xf32, #tpu.memory_space<vmem>>, vector<16x128xf32>
    %c0_1 = arith.constant 0 : index
    %c0_2 = arith.constant 0 : index
    %1 = vector.load %arg2[%c0_1, %c0_2] : memref<128x128xf32, #tpu.memory_space<vmem>>, vector<128x128xf32>
    %cst = arith.constant dense<0.000000e+00> : vector<16x128xf32>
    %2 = tpu.matmul %0, %1, %cst {dimension_numbers = #tpu.dot_dimension_numbers<[1], [0], [0], [1], [0, 0, 1, 1], [], []>} : vector<16x128xf32>, vector<128x128xf32>, vector<16x128xf32> -> vector<16x128xf32>
    %c0_3 = arith.constant 0 : index
    %c0_4 = arith.constant 0 : index
    %3 = vector.load %arg3[%c0_3, %c0_4] : memref<1x128xf32, #tpu.memory_space<vmem>>, vector<1x128xf32>
    %4 = vector.broadcast %3 : vector<1x128xf32> to vector<16x128xf32>
    %5 = arith.addf %2, %4 : vector<16x128xf32>
    %c0_5 = arith.constant 0 : index
    %c0_6 = arith.constant 0 : index
    %6 = vector.load %arg4[%c0_5, %c0_6] : memref<16x128xf32, #tpu.memory_space<vmem>>, vector<16x128xf32>
    %7 = arith.addf %5, %6 : vector<16x128xf32>
    %c0_7 = arith.constant 0 : index
    %c0_8 = arith.constant 0 : index
    %8 = vector.load %arg5[%c0_7, %c0_8] : memref<16x128xf32, #tpu.memory_space<vmem>>, vector<16x128xf32>
    tpu.vector_store %arg5[%c0_7, %c0_8], %7 {strides = array<i32>} : memref<16x128xf32, #tpu.memory_space<vmem>>, vector<16x128xf32>,
    return
  }
  func.func @transform_0(%arg0: i32) -> (i32, i32) {
    %c0_i32 = arith.constant 0 : i32
    %c0_i32_0 = arith.constant 0 : i32
    return %arg0, %c0_i32 : i32, i32
  }
  func.func @transform_1(%arg0: i32) -> (i32, i32) {
    %c0_i32 = arith.constant 0 : i32
    %c0_i32_0 = arith.constant 0 : i32
    %c0_i32_1 = arith.constant 0 : i32
    return %c0_i32, %c0_i32_0 : i32, i32
  }
  func.func @transform_2(%arg0: i32) -> (i32, i32) {
    %c0_i32 = arith.constant 0 : i32
    %c0_i32_0 = arith.constant 0 : i32
    %c0_i32_1 = arith.constant 0 : i32
    return %c0_i32, %c0_i32_0 : i32, i32
  }
  func.func @transform_3(%arg0: i32) -> (i32, i32) {
    %c0_i32 = arith.constant 0 : i32
    %c0_i32_0 = arith.constant 0 : i32
    return %arg0, %c0_i32 : i32, i32
  }
  func.func @transform_4(%arg0: i32) -> (i32, i32) {
    %c0_i32 = arith.constant 0 : i32
    %c0_i32_0 = arith.constant 0 : i32
    return %arg0, %c0_i32 : i32, i32
  }
}

module attributes {stable_mosaic.version = 11 : i64} {
  func.func @_ln_matmul_bias_kernel(%arg0: i32, %arg1: memref<16x128xf32, #tpu.memory_space<vmem>>, %arg2: memref<1x128xf32, #tpu.memory_space<vmem>>, %arg3: memref<1x128xf32, #tpu.memory_space<vmem>>, %arg4: memref<128x256xf32, #tpu.memory_space<vmem>>, %arg5: memref<1x256xf32, #tpu.memory_space<vmem>>, %arg6: memref<16x256xf32, #tpu.memory_space<vmem>>) attributes {dimension_semantics = [#tpu.dimension_semantics<parallel>], iteration_bounds = array<i64: 1>, scalar_prefetch = 0 : i64, scratch_operands = 0 : i64, tpu.core_type = #tpu.core_type<tc>, window_params = [{transform_indices = @transform_0, window_bounds = array<i64: 16, 128>}, {pipeline_mode = #tpu.pipeline_mode<synchronous>, transform_indices = @transform_1, window_bounds = array<i64: 1, 128>}, {pipeline_mode = #tpu.pipeline_mode<synchronous>, transform_indices = @transform_2, window_bounds = array<i64: 1, 128>}, {pipeline_mode = #tpu.pipeline_mode<synchronous>, transform_indices = @transform_3, window_bounds = array<i64: 128, 256>}, {pipeline_mode = #tpu.pipeline_mode<synchronous>, transform_indices = @transform_4, window_bounds = array<i64: 1, 256>}, {transform_indices = @transform_5, window_bounds = array<i64: 16, 256>}]} {
    %c0 = arith.constant 0 : index
    %c0_0 = arith.constant 0 : index
    %0 = vector.load %arg1[%c0, %c0_0] : memref<16x128xf32, #tpu.memory_space<vmem>>, vector<16x128xf32>
    %cst = arith.constant dense<0.000000e+00> : vector<16xf32>
    %1 = vector.multi_reduction <add>, %0, %cst [1] : vector<16x128xf32> to vector<16xf32>
    %2 = vector.shape_cast %1 : vector<16xf32> to vector<16x1xf32>
    %cst_1 = arith.constant 1.280000e+02 : f32
    %3 = vector.broadcast %cst_1 : f32 to vector<16x1xf32>
    %4 = arith.divf %2, %3 : vector<16x1xf32>
    %5 = vector.broadcast %4 : vector<16x1xf32> to vector<16x128xf32>
    %6 = arith.subf %0, %5 : vector<16x128xf32>
    %7 = arith.mulf %6, %6 : vector<16x128xf32>
    %cst_2 = arith.constant dense<0.000000e+00> : vector<16xf32>
    %8 = vector.multi_reduction <add>, %7, %cst_2 [1] : vector<16x128xf32> to vector<16xf32>
    %9 = vector.shape_cast %8 : vector<16xf32> to vector<16x1xf32>
    %cst_3 = arith.constant 1.270000e+02 : f32
    %10 = vector.broadcast %cst_3 : f32 to vector<16x1xf32>
    %11 = arith.divf %9, %10 : vector<16x1xf32>
    %12 = math.sqrt %11 : vector<16x1xf32>
    %cst_4 = arith.constant 9.99999997E-7 : f32
    %13 = vector.broadcast %cst_4 : f32 to vector<16x1xf32>
    %14 = arith.addf %12, %13 : vector<16x1xf32>
    %15 = tpu.reciprocal %14 : vector<16x1xf32> -> vector<16x1xf32>
    %c0_5 = arith.constant 0 : index
    %c0_6 = arith.constant 0 : index
    %16 = vector.load %arg2[%c0_5, %c0_6] : memref<1x128xf32, #tpu.memory_space<vmem>>, vector<1x128xf32>
    %17 = vector.broadcast %15 : vector<16x1xf32> to vector<16x128xf32>
    %18 = arith.mulf %6, %17 : vector<16x128xf32>
    %19 = vector.broadcast %16 : vector<1x128xf32> to vector<16x128xf32>
    %20 = arith.mulf %19, %18 : vector<16x128xf32>
    %c0_7 = arith.constant 0 : index
    %c0_8 = arith.constant 0 : index
    %21 = vector.load %arg3[%c0_7, %c0_8] : memref<1x128xf32, #tpu.memory_space<vmem>>, vector<1x128xf32>
    %22 = vector.broadcast %21 : vector<1x128xf32> to vector<16x128xf32>
    %23 = arith.addf %20, %22 : vector<16x128xf32>
    %c0_9 = arith.constant 0 : index
    %c0_10 = arith.constant 0 : index
    %24 = vector.load %arg4[%c0_9, %c0_10] : memref<128x256xf32, #tpu.memory_space<vmem>>, vector<128x256xf32>
    %cst_11 = arith.constant dense<0.000000e+00> : vector<16x256xf32>
    %25 = tpu.matmul %23, %24, %cst_11 {dimension_numbers = #tpu.dot_dimension_numbers<[1], [0], [0], [1], [0, 0, 1, 1], [], []>} : vector<16x128xf32>, vector<128x256xf32>, vector<16x256xf32> -> vector<16x256xf32>
    %c0_12 = arith.constant 0 : index
    %c0_13 = arith.constant 0 : index
    %26 = vector.load %arg5[%c0_12, %c0_13] : memref<1x256xf32, #tpu.memory_space<vmem>>, vector<1x256xf32>
    %27 = vector.broadcast %26 : vector<1x256xf32> to vector<16x256xf32>
    %28 = arith.addf %25, %27 : vector<16x256xf32>
    %cst_14 = arith.constant 0.000000e+00 : f32
    %29 = vector.broadcast %cst_14 : f32 to vector<16x256xf32>
    %30 = arith.maximumf %28, %29 : vector<16x256xf32>
    %c0_15 = arith.constant 0 : index
    %c0_16 = arith.constant 0 : index
    %31 = vector.load %arg6[%c0_15, %c0_16] : memref<16x256xf32, #tpu.memory_space<vmem>>, vector<16x256xf32>
    tpu.vector_store %arg6[%c0_15, %c0_16], %30 {strides = array<i32>} : memref<16x256xf32, #tpu.memory_space<vmem>>, vector<16x256xf32>,
    return
  }
  func.func @transform_0(%arg0: i32) -> (i32, i32) {
    %c0_i32 = arith.constant 0 : i32
    %c0_i32_0 = arith.constant 0 : i32
    return %arg0, %c0_i32 : i32, i32
  }
  func.func @transform_1(%arg0: i32) -> (i32, i32) {
    %c0_i32 = arith.constant 0 : i32
    %c0_i32_0 = arith.constant 0 : i32
    %c0_i32_1 = arith.constant 0 : i32
    return %c0_i32, %c0_i32_0 : i32, i32
  }
  func.func @transform_2(%arg0: i32) -> (i32, i32) {
    %c0_i32 = arith.constant 0 : i32
    %c0_i32_0 = arith.constant 0 : i32
    %c0_i32_1 = arith.constant 0 : i32
    return %c0_i32, %c0_i32_0 : i32, i32
  }
  func.func @transform_3(%arg0: i32) -> (i32, i32) {
    %c0_i32 = arith.constant 0 : i32
    %c0_i32_0 = arith.constant 0 : i32
    %c0_i32_1 = arith.constant 0 : i32
    return %c0_i32, %c0_i32_0 : i32, i32
  }
  func.func @transform_4(%arg0: i32) -> (i32, i32) {
    %c0_i32 = arith.constant 0 : i32
    %c0_i32_0 = arith.constant 0 : i32
    %c0_i32_1 = arith.constant 0 : i32
    return %c0_i32, %c0_i32_0 : i32, i32
  }
  func.func @transform_5(%arg0: i32) -> (i32, i32) {
    %c0_i32 = arith.constant 0 : i32
    %c0_i32_0 = arith.constant 0 : i32
    return %arg0, %c0_i32 : i32, i32
  }
}

module attributes {stable_mosaic.version = 11 : i64} {
  func.func @_matmul_bias_residual_kernel(%arg0: i32, %arg1: memref<16x256xf32, #tpu.memory_space<vmem>>, %arg2: memref<256x128xf32, #tpu.memory_space<vmem>>, %arg3: memref<1x128xf32, #tpu.memory_space<vmem>>, %arg4: memref<16x128xf32, #tpu.memory_space<vmem>>, %arg5: memref<16x128xf32, #tpu.memory_space<vmem>>) attributes {dimension_semantics = [#tpu.dimension_semantics<parallel>], iteration_bounds = array<i64: 1>, scalar_prefetch = 0 : i64, scratch_operands = 0 : i64, tpu.core_type = #tpu.core_type<tc>, window_params = [{transform_indices = @transform_0, window_bounds = array<i64: 16, 256>}, {pipeline_mode = #tpu.pipeline_mode<synchronous>, transform_indices = @transform_1, window_bounds = array<i64: 256, 128>}, {pipeline_mode = #tpu.pipeline_mode<synchronous>, transform_indices = @transform_2, window_bounds = array<i64: 1, 128>}, {transform_indices = @transform_3, window_bounds = array<i64: 16, 128>}, {transform_indices = @transform_4, window_bounds = array<i64: 16, 128>}]} {
    %c0 = arith.constant 0 : index
    %c0_0 = arith.constant 0 : index
    %0 = vector.load %arg1[%c0, %c0_0] : memref<16x256xf32, #tpu.memory_space<vmem>>, vector<16x256xf32>
    %c0_1 = arith.constant 0 : index
    %c0_2 = arith.constant 0 : index
    %1 = vector.load %arg2[%c0_1, %c0_2] : memref<256x128xf32, #tpu.memory_space<vmem>>, vector<256x128xf32>
    %cst = arith.constant dense<0.000000e+00> : vector<16x128xf32>
    %2 = tpu.matmul %0, %1, %cst {dimension_numbers = #tpu.dot_dimension_numbers<[1], [0], [0], [1], [0, 0, 1, 1], [], []>} : vector<16x256xf32>, vector<256x128xf32>, vector<16x128xf32> -> vector<16x128xf32>
    %c0_3 = arith.constant 0 : index
    %c0_4 = arith.constant 0 : index
    %3 = vector.load %arg3[%c0_3, %c0_4] : memref<1x128xf32, #tpu.memory_space<vmem>>, vector<1x128xf32>
    %4 = vector.broadcast %3 : vector<1x128xf32> to vector<16x128xf32>
    %5 = arith.addf %2, %4 : vector<16x128xf32>
    %c0_5 = arith.constant 0 : index
    %c0_6 = arith.constant 0 : index
    %6 = vector.load %arg4[%c0_5, %c0_6] : memref<16x128xf32, #tpu.memory_space<vmem>>, vector<16x128xf32>
    %7 = arith.addf %5, %6 : vector<16x128xf32>
    %c0_7 = arith.constant 0 : index
    %c0_8 = arith.constant 0 : index
    %8 = vector.load %arg5[%c0_7, %c0_8] : memref<16x128xf32, #tpu.memory_space<vmem>>, vector<16x128xf32>
    tpu.vector_store %arg5[%c0_7, %c0_8], %7 {strides = array<i32>} : memref<16x128xf32, #tpu.memory_space<vmem>>, vector<16x128xf32>,
    return
  }
  func.func @transform_0(%arg0: i32) -> (i32, i32) {
    %c0_i32 = arith.constant 0 : i32
    %c0_i32_0 = arith.constant 0 : i32
    return %arg0, %c0_i32 : i32, i32
  }
  func.func @transform_1(%arg0: i32) -> (i32, i32) {
    %c0_i32 = arith.constant 0 : i32
    %c0_i32_0 = arith.constant 0 : i32
    %c0_i32_1 = arith.constant 0 : i32
    return %c0_i32, %c0_i32_0 : i32, i32
  }
  func.func @transform_2(%arg0: i32) -> (i32, i32) {
    %c0_i32 = arith.constant 0 : i32
    %c0_i32_0 = arith.constant 0 : i32
    %c0_i32_1 = arith.constant 0 : i32
    return %c0_i32, %c0_i32_0 : i32, i32
  }
  func.func @transform_3(%arg0: i32) -> (i32, i32) {
    %c0_i32 = arith.constant 0 : i32
    %c0_i32_0 = arith.constant 0 : i32
    return %arg0, %c0_i32 : i32, i32
  }
  func.func @transform_4(%arg0: i32) -> (i32, i32) {
    %c0_i32 = arith.constant 0 : i32
    %c0_i32_0 = arith.constant 0 : i32
    return %arg0, %c0_i32 : i32, i32
  }
}

</mosaic_0001>

<bundles_post_ra>
// kernel: encoder_layer.7
= control target key start
LH: loop header
LB: loop body
LE: loop exit
PB: predicated region body
PF: predicated region fallthrough
CT: control target
= control target key end

     0   :  { %s183_s1 = inlined_call_operand.vmem [shape: f32[128,128], index: 1, kind: input, shape index: {}]   ;;  %s184_s2 = inlined_call_operand.vmem [shape: f32[1,128], index: 2, kind: input, shape index: {}]   ;;  %s185_s0 = inlined_call_operand.vmem [shape: f32[16,128], index: 0, kind: input, shape index: {}]   ;;  %s186_s3 = inlined_call_operand.vmem [shape: f32[16,128], index: 3, kind: input, shape index: {}, may-alias: {3,4}]   ;;  %s187_s4 = inlined_call_operand.vmem [shape: f32[16,128], index: 4, kind: output, shape index: {}, may-alias: {3,4}]  }
   0x1   :  { %v34_v0 = vld [vmem:[%s183_s1 + $0x78] sm:$0xff]  ;;  %v33_v1 = vld [vmem:[%s183_s1 + $0x70] sm:$0xff]  ;;  %v32_v2 = vld [vmem:[%s183_s1 + $0x68] sm:$0xff] }
   0x2   :  { %39 = vmatpush.msra.mxu0 %v34_v0  ;;  %72 = vmatpush.msra.mxu1 %v34_v0  ;;  %v31_v3 = vld [vmem:[%s183_s1 + $0x60] sm:$0xff]  ;;  %v30_v4 = vld [vmem:[%s183_s1 + $0x58] sm:$0xff]  ;;  %v29_v5 = vld [vmem:[%s183_s1 + $0x50] sm:$0xff] }
   0x3   :  { %v28_v6 = vld [vmem:[%s183_s1 + $0x48] sm:$0xff]  ;;  %v27_v7 = vld [vmem:[%s183_s1 + $0x40] sm:$0xff]  ;;  %v26_v8 = vld [vmem:[%s183_s1 + $0x38] sm:$0xff] }
   0x4   :  { %40 = vmatpush.msra.mxu0 %v33_v1  ;;  %73 = vmatpush.msra.mxu1 %v33_v1  ;;  %v25_v9 = vld [vmem:[%s183_s1 + $0x30] sm:$0xff]  ;;  %v24_v10 = vld [vmem:[%s183_s1 + $0x28] sm:$0xff]  ;;  %v23_v11 = vld [vmem:[%s183_s1 + $0x20] sm:$0xff] }
   0x5   :  { %v22_v12 = vld [vmem:[%s183_s1 + $0x18] sm:$0xff]  ;;  %v21_v13 = vld [vmem:[%s183_s1 + $0x10] sm:$0xff]  ;;  %v20_v14 = vld [vmem:[%s183_s1 + $0x8] sm:$0xff] }
   0x6   :  { %41 = vmatpush.msra.mxu0 %v32_v2  ;;  %74 = vmatpush.msra.mxu1 %v32_v2  ;;  %v19_v15 = vld [vmem:[%s183_s1] sm:$0xff]  ;;  %v18_v17 = vld [vmem:[%s185_s0 + $0x8] sm:$0xff] }
   0x7   :  { %v17_v16 = vld [vmem:[%s185_s0] sm:$0xff]  ;;  %v63_v22 = vld [vmem:[%s186_s3 + $0x8] sm:$0xff] }
   0x8   :  { %42 = vmatpush.msra.mxu0 %v31_v3  ;;  %75 = vmatpush.msra.mxu1 %v31_v3  ;;  %v88_v18 = vld [vmem:[%s184_s2] ss:$0 sm:$0xff] }
   0x9   :  { %v62_v20 = vld [vmem:[%s186_s3] sm:$0xff] }
   0xa   :  { %43 = vmatpush.msra.mxu0 %v30_v4  ;;  %76 = vmatpush.msra.mxu1 %v30_v4 }
   0xc   :  { %44 = vmatpush.msra.mxu0 %v29_v5  ;;  %77 = vmatpush.msra.mxu1 %v29_v5 }
   0xe   :  { %45 = vmatpush.msra.mxu0 %v28_v6  ;;  %78 = vmatpush.msra.mxu1 %v28_v6 }
  0x10   :  { %46 = vmatpush.msra.mxu0 %v27_v7  ;;  %79 = vmatpush.msra.mxu1 %v27_v7 }
  0x12   :  { %47 = vmatpush.msra.mxu0 %v26_v8  ;;  %80 = vmatpush.msra.mxu1 %v26_v8 }
  0x14   :  { %48 = vmatpush.msra.mxu0 %v25_v9  ;;  %81 = vmatpush.msra.mxu1 %v25_v9 }
  0x16   :  { %49 = vmatpush.msra.mxu0 %v24_v10  ;;  %82 = vmatpush.msra.mxu1 %v24_v10 }
  0x18   :  { %50 = vmatpush.msra.mxu0 %v23_v11  ;;  %83 = vmatpush.msra.mxu1 %v23_v11 }
  0x1a   :  { %51 = vmatpush.msra.mxu0 %v22_v12  ;;  %84 = vmatpush.msra.mxu1 %v22_v12 }
  0x1c   :  { %52 = vmatpush.msra.mxu0 %v21_v13  ;;  %85 = vmatpush.msra.mxu1 %v21_v13 }
  0x1e   :  { %53 = vmatpush.msra.mxu0 %v20_v14  ;;  %86 = vmatpush.msra.mxu1 %v20_v14 }
  0x20   :  { %54 = vmatpush.msra.mxu0 %v19_v15  ;;  %87 = vmatpush.msra.mxu1 %v19_v15 }
  0x21   :  { %55 = vmatmul.f32.vlgmr.msra.gmra.mxu0 %v17_v16  ;;  %58 = vmatmul.f32.vlgmr.msra.gmra.mxu1 %v18_v17 }
  0x9e   :  { %v56_v19 = vpop.f32.mrf.mxu0  ;;  %v59_v21 = vpop.f32.mrf.mxu1 }
  0x9f   :  { %v57_v23 = vadd.f32 %v88_v18, %v56_v19  ;;  %v60_v24 = vadd.f32 %v88_v18, %v59_v21 }
  0xa1   :  { %v64_v25 = vadd.f32 %v62_v20, %v57_v23  ;;  %v65_v26 = vadd.f32 %v63_v22, %v60_v24 }
  0xa3   :  { %66 = vst [vmem:[%s187_s4] sm:$0xff] %v64_v25 }
  0xa4   :  { %67 = vst [vmem:[%s187_s4 + $0x8] sm:$0xff] %v65_v26 }

// kernel: encoder_layer.6
= control target key start
LH: loop header
LB: loop body
LE: loop exit
PB: predicated region body
PF: predicated region fallthrough
CT: control target
= control target key end

     0   :  { %s451_s15 = smov 0   ;;  %s489_s0 = inlined_call_operand.vmem [shape: f32[8,8,32], index: 0, kind: input, shape index: {}]   ;;  %s490_s1 = inlined_call_operand.vmem [shape: f32[8,8,32], index: 1, kind: input, shape index: {}]   ;;  %s491_s2 = inlined_call_operand.vmem [shape: f32[8,8,32], index: 2, kind: input, shape index: {}]   ;;  %s492_s3 = inlined_call_operand.vmem [shape: f32[1,8], index: 3, kind: input, shape index: {}]   ;;  %s493_s4 = inlined_call_operand.vmem [shape: f32[8,8,32], index: 4, kind: output, shape index: {}]  }
   0x1 LB: > { %s390_s16 = sadd.s32 4294967295, %s423_s15   ;;  %p394_p0 = scmp.ge.s32.totalorder %s423_s15, 1  ;;  %s423_s15 = sphi %s451_s15, %s14_s15  }
   0x2   : > { %p179_p1 = scmp.lt.s32.totalorder %s423_s15, 9 }
   0x4   : > { %p180_p2 = pnand %p394_p0, %p179_p1 }
   0x5   : > { %p211_p3 = scmp.lt.s32.totalorder (!%p180_p2), %s390_s16, 7 }
   0x6   : > { %183 = sbr.rel (%p180_p2) target bundleno = 538 (0x21a), region = 36 }
   0xb   : > { %s495_s16 = smov (!%p211_p3, %s390_s16), 7  ;;  %vm230_vm0 = vcmask 261120   ;;  %v258_v2 = vld [vmem:[%s492_s3] sm:$0x1]  ;;  %v425_v3 = vmov 0   ;;  %vm264_vm3 = vcmask 64512  }
   0xc   : > { %s459_s17 = sshll.u32 %s495_s16, 3  ;;  %vm259_vm1 = vcmp.eq.f32.partialorder %v258_v2, 0.0 }
   0xd   : > { %s218_s20 = scalar_lea.vmem %s490_s1, %s459_s17  ;;  %s214_s23 = scalar_lea.vmem %s489_s0, %s459_s17  ;;  %v260_v4 = vsel %vm259_vm1, 1, %v425_v3 }
   0xe   : > { %v228_v0 = vld [vmem:[%s218_s20] sm:$0xff]  ;;  %v261_v5 = vperm.slane %v260_v4, 0  ;;  %s222_s28 = scalar_lea.vmem %s491_s2, %s459_s17  ;;  %s226_s5 = scalar_lea.vmem %s493_s4, %s459_s17 }
   0xf   : > { %399 = vmatpush.xpose.msk.msra.mxu0 %vm230_vm0, %v228_v0  ;;  %v227_v1 = vld [vmem:[%s214_s23] sm:$0xff] }
  0x10   : > { %vm262_vm2 = vcmp.eq.s32.totalorder %v261_v5, 1  ;;  %v229_v15 = vld [vmem:[%s222_s28] sm:$0xff] }
  0x11   : > { %307 = vmatpush.msra.mxu1 %v229_v15 }
  0x12   : > { %400 = vmatmul.msk.f32.vlgmr.msra.gmra.mxu0 %vm230_vm0, %v227_v1 }
  0x8f   : > { %v254_v6 = vpop.f32.mrf.mxu0 }
  0x90   : > { %v257_v7 = vmul.f32 0.17677669, %v254_v6 }
  0x92   : > { %v263_v8 = vsel %vm262_vm2, -1e+09, %v257_v7 }
  0x93   : > { %v265_v9 = vsel %vm264_vm3, %v263_v8, -inf }
  0x94   : > { %266 = vmax.xlane.f32.xlu0 %v265_v9 }
 0x107   : > { %v267_v10 = vpop.xlane.xlu0 %266 }
 0x108   : > { %v268_v11 = vsub.f32 %v263_v8, %v267_v10 }
 0x10a   : > { %v269_v12 = vmul.f32 1.442695, %v268_v11 }
 0x10c   : > { %413 = vpow2.f32 %v269_v12 }
 0x112   : > { %v414_v13 = vpop.eup %413 }
 0x113   : > { %v271_v14 = vsel %vm264_vm3, %v414_v13, 0.0 }
 0x114   : > { %272 = vadd.xlane.f32.xlu0 %v271_v14 }
 0x187   : > { %v273_v16 = vpop.xlane.xlu0 %272 }
 0x188   : > { %415 = vrcp.f32 %v273_v16  ;;  %v285_v20 = vand.u32 2147483648, %v273_v16  ;;  %v283_v22 = vand.u32 2147483647, %v273_v16  ;;  %vm279_vm5 = vweird.f32 %v273_v16 }
 0x18a   : > { %v286_v24 = vor.u32 1.1754944e-38, %v285_v20  ;;  %vm284_vm7 = vcmp.eq.f32.partialorder %v283_v22, 8.507059e+37 }
 0x18e   : > { %v416_v17 = vpop.eup %415 }
 0x18f   : > { %v275_v18 = vmul.f32 %v416_v17, %v273_v16  ;;  %vm280_vm4 = vweird.f32 %v416_v17 }
 0x190   : > { %vm281_vm6 = vmor %vm279_vm5, %vm280_vm4 }
 0x191   : > { %v276_v19 = vsub.f32 1.0, %v275_v18 }
 0x193   : > { %v277_v21 = vmul.f32 %v416_v17, %v276_v19 }
 0x195   : > { %v278_v23 = vadd.f32 %v416_v17, %v277_v21 }
 0x197   : > { %v282_v25 = vsel %vm281_vm6, %v416_v17, %v278_v23 }
 0x198   : > { %v287_v26 = vsel %vm284_vm7, %v286_v24, %v282_v25 }
 0x199   : > { %v288_v27 = vmul.f32 %v414_v13, %v287_v26 }
 0x19b   : > { %401 = vmatmul.msk.f32.vlgmr.msra.gmra.mxu1 %vm264_vm3, %v288_v27 }
 0x218   : > { %v309_v28 = vpop.f32.mrf.mxu1 }
 0x219   : > { %312 = vst.msk [vmem:[%s226_s5] sm:$0xff] %vm230_vm0, %v309_v28 }
 0x21a PF: > { %s14_s15 = sadd.s32 1, %s423_s15  }
 0x21b   : > { %p11_p4 = scmp.ge.s32.totalorder %s14_s15, 10  }
 0x21d   :  { %13 = sbr.rel (!%p11_p4) target bundleno = 1 (0x1), region = 72 }

// kernel: encoder_layer.8
= control target key start
LH: loop header
LB: loop body
LE: loop exit
PB: predicated region body
PF: predicated region fallthrough
CT: control target
= control target key end

     0   :  { %v264_v2 = vmov 128.0   ;;  %v265_v17 = vmov 127.0   ;;  %s438_s0 = inlined_call_operand.vmem [shape: f32[16,128], index: 0, kind: input, shape index: {}]   ;;  %s439_s1 = inlined_call_operand.vmem [shape: f32[1,128], index: 1, kind: input, shape index: {}]   ;;  %s440_s2 = inlined_call_operand.vmem [shape: f32[1,128], index: 2, kind: input, shape index: {}]   ;;  %s441_s3 = inlined_call_operand.vmem [shape: f32[128,256], index: 3, kind: input, shape index: {}]   ;;  %s442_s4 = inlined_call_operand.vmem [shape: f32[1,256], index: 4, kind: input, shape index: {}]   ;;  %s443_s5 = inlined_call_operand.vmem [shape: f32[16,256], index: 5, kind: output, shape index: {}]  }
   0x1   :  { %v21_v0 = vld [vmem:[%s438_s0 + $0x8] sm:$0xff]  ;;  %v20_v1 = vld [vmem:[%s438_s0] sm:$0xff]  ;;  %252 = vrcp.f32 %v264_v2  ;;  %v150_v20 = vld [vmem:[%s441_s3 + $0xf0] sm:$0xff] }
   0x2   :  { %24 = vadd.xlane.f32.xlu0 %v21_v0  ;;  %254 = vrcp.f32 %v265_v17  ;;  %v151_v21 = vld [vmem:[%s441_s3 + $0xf8] sm:$0xff]  ;;  %216 = vmatpush.msra.mxu2 %v150_v20  ;;  %v148_v23 = vld [vmem:[%s441_s3 + $0xe0] sm:$0xff]  ;;  %v149_v24 = vld [vmem:[%s441_s3 + $0xe8] sm:$0xff] }
   0x3   :  { %232 = vmatpush.msra.mxu3 %v151_v21  ;;  %158 = vmatpush.msra.mxu0 %v150_v20  ;;  %v146_v25 = vld [vmem:[%s441_s3 + $0xd0] sm:$0xff]  ;;  %v147_v26 = vld [vmem:[%s441_s3 + $0xd8] sm:$0xff]  ;;  %v144_v28 = vld [vmem:[%s441_s3 + $0xc0] sm:$0xff] }
   0x4   :  { %181 = vmatpush.msra.mxu1 %v151_v21  ;;  %217 = vmatpush.msra.mxu2 %v148_v23  ;;  %v145_v29 = vld [vmem:[%s441_s3 + $0xc8] sm:$0xff]  ;;  %v142_v30 = vld [vmem:[%s441_s3 + $0xb0] sm:$0xff]  ;;  %v143_v31 = vld [vmem:[%s441_s3 + $0xb8] sm:$0xff] }
   0x5   :  { %233 = vmatpush.msra.mxu3 %v149_v24  ;;  %159 = vmatpush.msra.mxu0 %v148_v23  ;;  %v140_v33 = vld [vmem:[%s441_s3 + $0xa0] sm:$0xff]  ;;  %v141_v34 = vld [vmem:[%s441_s3 + $0xa8] sm:$0xff]  ;;  %v138_v35 = vld [vmem:[%s441_s3 + $0x90] sm:$0xff] }
   0x6   :  { %182 = vmatpush.msra.mxu1 %v149_v24  ;;  %218 = vmatpush.msra.mxu2 %v146_v25  ;;  %v139_v36 = vld [vmem:[%s441_s3 + $0x98] sm:$0xff]  ;;  %v136_v37 = vld [vmem:[%s441_s3 + $0x80] sm:$0xff]  ;;  %v137_v38 = vld [vmem:[%s441_s3 + $0x88] sm:$0xff] }
   0x7   :  { %v253_v3 = vpop.eup %252  ;;  %234 = vmatpush.msra.mxu3 %v147_v26  ;;  %160 = vmatpush.msra.mxu0 %v146_v25  ;;  %v134_v40 = vld [vmem:[%s441_s3 + $0x70] sm:$0xff]  ;;  %v135_v41 = vld [vmem:[%s441_s3 + $0x78] sm:$0xff]  ;;  %v132_v44 = vld [vmem:[%s441_s3 + $0x60] sm:$0xff] }
   0x8   :  { %v27_v4 = vmul.f32 128.0, %v253_v3  ;;  %vm31_vm0 = vweird.f32 %v253_v3  ;;  %v255_v18 = vpop.eup %254  ;;  %183 = vmatpush.msra.mxu1 %v147_v26  ;;  %219 = vmatpush.msra.mxu2 %v144_v28  ;;  %v133_v45 = vld [vmem:[%s441_s3 + $0x68] sm:$0xff]  ;;  %v130_v46 = vld [vmem:[%s441_s3 + $0x50] sm:$0xff]  ;;  %v131_v47 = vld [vmem:[%s441_s3 + $0x58] sm:$0xff] }
   0x9   :  { %v44_v19 = vmul.f32 127.0, %v255_v18  ;;  %235 = vmatpush.msra.mxu3 %v145_v29  ;;  %161 = vmatpush.msra.mxu0 %v144_v28  ;;  %vm48_vm1 = vweird.f32 %v255_v18  ;;  %v128_v48 = vld [vmem:[%s441_s3 + $0x40] sm:$0xff]  ;;  %v129_v49 = vld [vmem:[%s441_s3 + $0x48] sm:$0xff]  ;;  %v126_v50 = vld [vmem:[%s441_s3 + $0x30] sm:$0xff] }
   0xa   :  { %22 = vadd.xlane.f32.xlu0 %v20_v1  ;;  %v28_v5 = vsub.f32 1.0, %v27_v4  ;;  %184 = vmatpush.msra.mxu1 %v145_v29  ;;  %v127_v51 = vld [vmem:[%s441_s3 + $0x38] sm:$0xff]  ;;  %v124_v55 = vld [vmem:[%s441_s3 + $0x20] sm:$0xff]  ;;  %v125_v56 = vld [vmem:[%s441_s3 + $0x28] sm:$0xff] }
   0xb   :  { %v45_v22 = vsub.f32 1.0, %v44_v19  ;;  %220 = vmatpush.msra.mxu2 %v142_v30  ;;  %236 = vmatpush.msra.mxu3 %v143_v31  ;;  %v122_v58 = vld [vmem:[%s441_s3 + $0x10] sm:$0xff]  ;;  %v123_v59 = vld [vmem:[%s441_s3 + $0x18] sm:$0xff]  ;;  %v120_v61 = vld [vmem:[%s441_s3] sm:$0xff] }
   0xc   :  { %v29_v6 = vmul.f32 %v253_v3, %v28_v5  ;;  %162 = vmatpush.msra.mxu0 %v142_v30  ;;  %185 = vmatpush.msra.mxu1 %v143_v31  ;;  %v121_v62 = vld [vmem:[%s441_s3 + $0x8] sm:$0xff]  ;;  %v250_v30 = vld [vmem:[%s439_s1] ss:$0 sm:$0xff] }
   0xd   :  { %v46_v27 = vmul.f32 %v255_v18, %v45_v22  ;;  %221 = vmatpush.msra.mxu2 %v140_v33  ;;  %237 = vmatpush.msra.mxu3 %v141_v34 }
   0xe   :  { %v30_v7 = vadd.f32 %v253_v3, %v29_v6  ;;  %163 = vmatpush.msra.mxu0 %v140_v33  ;;  %186 = vmatpush.msra.mxu1 %v141_v34  ;;  %v251_v34 = vld [vmem:[%s440_s2] ss:$0 sm:$0xff] }
   0xf   :  { %v47_v32 = vadd.f32 %v255_v18, %v46_v27  ;;  %222 = vmatpush.msra.mxu2 %v138_v35  ;;  %238 = vmatpush.msra.mxu3 %v139_v36 }
  0x10   :  { %v32_v8 = vsel %vm31_vm0, %v253_v3, %v30_v7  ;;  %164 = vmatpush.msra.mxu0 %v138_v35  ;;  %187 = vmatpush.msra.mxu1 %v139_v36 }
  0x11   :  { %v49_v39 = vsel %vm48_vm1, %v255_v18, %v47_v32  ;;  %223 = vmatpush.msra.mxu2 %v136_v37  ;;  %239 = vmatpush.msra.mxu3 %v137_v38 }
  0x12   :  { %165 = vmatpush.msra.mxu0 %v136_v37  ;;  %188 = vmatpush.msra.mxu1 %v137_v38 }
  0x13   :  { %224 = vmatpush.msra.mxu2 %v134_v40  ;;  %240 = vmatpush.msra.mxu3 %v135_v41 }
  0x14   :  { %166 = vmatpush.msra.mxu0 %v134_v40  ;;  %189 = vmatpush.msra.mxu1 %v135_v41 }
  0x15   :  { %225 = vmatpush.msra.mxu2 %v132_v44  ;;  %241 = vmatpush.msra.mxu3 %v133_v45 }
  0x16   :  { %167 = vmatpush.msra.mxu0 %v132_v44  ;;  %190 = vmatpush.msra.mxu1 %v133_v45 }
  0x17   :  { %226 = vmatpush.msra.mxu2 %v130_v46  ;;  %242 = vmatpush.msra.mxu3 %v131_v47 }
  0x18   :  { %168 = vmatpush.msra.mxu0 %v130_v46  ;;  %191 = vmatpush.msra.mxu1 %v131_v47  ;;  %v152_v47 = vld [vmem:[%s442_s4] sm:$0x3] }
  0x19   :  { %227 = vmatpush.msra.mxu2 %v128_v48  ;;  %243 = vmatpush.msra.mxu3 %v129_v49 }
  0x1a   :  { %169 = vmatpush.msra.mxu0 %v128_v48  ;;  %192 = vmatpush.msra.mxu1 %v129_v49  ;;  %v154_v48 = vperm.slane %v152_v47, 0  ;;  %v155_v49 = vperm.slane %v152_v47, 1 }
  0x1b   :  { %228 = vmatpush.msra.mxu2 %v126_v50  ;;  %244 = vmatpush.msra.mxu3 %v127_v51 }
  0x1c   :  { %170 = vmatpush.msra.mxu0 %v126_v50  ;;  %193 = vmatpush.msra.mxu1 %v127_v51 }
  0x1d   :  { %229 = vmatpush.msra.mxu2 %v124_v55  ;;  %245 = vmatpush.msra.mxu3 %v125_v56 }
  0x1e   :  { %171 = vmatpush.msra.mxu0 %v124_v55  ;;  %194 = vmatpush.msra.mxu1 %v125_v56 }
  0x1f   :  { %230 = vmatpush.msra.mxu2 %v122_v58  ;;  %246 = vmatpush.msra.mxu3 %v123_v59 }
  0x20   :  { %172 = vmatpush.msra.mxu0 %v122_v58  ;;  %195 = vmatpush.msra.mxu1 %v123_v59 }
  0x21   :  { %231 = vmatpush.msra.mxu2 %v120_v61  ;;  %247 = vmatpush.msra.mxu3 %v121_v62 }
  0x22   :  { %173 = vmatpush.msra.mxu0 %v120_v61  ;;  %196 = vmatpush.msra.mxu1 %v121_v62 }
  0x75   :  { %v25_v9 = vpop.xlane.xlu0 %24 }
  0x76   :  { %v34_v10 = vmul.f32 %v32_v8, %v25_v9 }
  0x78   :  { %v302_v11 = vsub.f32 %v21_v0, %v34_v10 }
  0x7a   :  { %v38_v12 = vmul.f32 %v302_v11, %v302_v11 }
  0x7c   :  { %41 = vadd.xlane.f32.xlu1 %v38_v12 }
  0x7d   :  { %v23_v13 = vpop.xlane.xlu0 %22 }
  0x7e   :  { %v33_v14 = vmul.f32 %v32_v8, %v23_v13 }
  0x80   :  { %v306_v15 = vsub.f32 %v20_v1, %v33_v14 }
  0x82   :  { %v37_v16 = vmul.f32 %v306_v15, %v306_v15 }
  0x84   :  { %39 = vadd.xlane.f32.xlu1 %v37_v16 }
  0xef   :  { %v42_v42 = vpop.xlane.xlu1 %41 }
  0xf0   :  { %v364_v43 = vmul.f32 %v49_v39, %v42_v42 }
  0xf2   :  { %256 = vrsqrt.f32 %v364_v43  ;;  %vm71_vm2 = vcmp.eq.f32.partialorder %v364_v43, inf  ;;  %v74_v6 = vand.u32 2147483648, %v364_v43  ;;  %vm73_vm3 = vcmp.eq.f32.partialorder %v364_v43, 0.0 }
  0xf7   :  { %v40_v52 = vpop.xlane.xlu1 %39 }
  0xf8   :  { %v257_v53 = vpop.eup %256  ;;  %v50_v54 = vmul.f32 %v49_v39, %v40_v52 }
  0xf9   :  { %v65_v57 = vmul.f32 %v257_v53, %v364_v43 }
  0xfa   :  { %258 = vrsqrt.f32 %v50_v54  ;;  %vm59_vm4 = vcmp.eq.f32.partialorder %v50_v54, inf  ;;  %v62_v16 = vand.u32 2147483648, %v50_v54  ;;  %vm61_vm5 = vcmp.eq.f32.partialorder %v50_v54, 0.0 }
  0xfb   :  { %v66_v60 = vmul.f32 %v257_v53, %v65_v57 }
  0xfd   :  { %v67_v63 = vmul.f32 0.5, %v66_v60 }
  0xff   :  { %v68_v0 = vsub.f32 1.5, %v67_v63 }
 0x100   :  { %v259_v1 = vpop.eup %258 }
 0x101   :  { %v69_v2 = vmul.f32 %v257_v53, %v68_v0  ;;  %v53_v3 = vmul.f32 %v259_v1, %v50_v54 }
 0x103   :  { %v70_v4 = vmul.f32 %v69_v2, %v364_v43  ;;  %v54_v5 = vmul.f32 %v259_v1, %v53_v3 }
 0x105   :  { %v55_v7 = vmul.f32 0.5, %v54_v5  ;;  %v72_v8 = vsel %vm71_vm2, %v364_v43, %v70_v4 }
 0x106   :  { %v75_v9 = vsel %vm73_vm3, %v74_v6, %v72_v8 }
 0x107   :  { %v56_v10 = vsub.f32 1.5, %v55_v7  ;;  %v77_v12 = vadd.f32 1e-06, %v75_v9 }
 0x109   :  { %v57_v13 = vmul.f32 %v259_v1, %v56_v10  ;;  %260 = vrcp.f32 %v77_v12  ;;  %v103_v23 = vand.u32 2147483648, %v77_v12  ;;  %v101_v25 = vand.u32 2147483647, %v77_v12 }
 0x10a   :  { %vm97_vm7 = vweird.f32 %v77_v12 }
 0x10b   :  { %v58_v14 = vmul.f32 %v57_v13, %v50_v54  ;;  %v104_v28 = vor.u32 1.1754944e-38, %v103_v23  ;;  %vm102_vm9 = vcmp.eq.f32.partialorder %v101_v25, 8.507059e+37 }
 0x10d   :  { %v60_v17 = vsel %vm59_vm4, %v50_v54, %v58_v14 }
 0x10e   :  { %v63_v18 = vsel %vm61_vm5, %v62_v16, %v60_v17 }
 0x10f   :  { %v261_v19 = vpop.eup %260  ;;  %v76_v20 = vadd.f32 1e-06, %v63_v18 }
 0x110   :  { %v93_v21 = vmul.f32 %v261_v19, %v77_v12  ;;  %vm98_vm6 = vweird.f32 %v261_v19 }
 0x111   :  { %262 = vrcp.f32 %v76_v20  ;;  %vm99_vm8 = vmor %vm97_vm7, %vm98_vm6  ;;  %v89_v36 = vand.u32 2147483648, %v76_v20  ;;  %v87_v39 = vand.u32 2147483647, %v76_v20  ;;  %vm83_vm11 = vweird.f32 %v76_v20 }
 0x112   :  { %v94_v22 = vsub.f32 1.0, %v93_v21 }
 0x113   :  { %v90_v42 = vor.u32 1.1754944e-38, %v89_v36  ;;  %vm88_vm13 = vcmp.eq.f32.partialorder %v87_v39, 8.507059e+37 }
 0x114   :  { %v95_v24 = vmul.f32 %v261_v19, %v94_v22 }
 0x116   :  { %v96_v26 = vadd.f32 %v261_v19, %v95_v24 }
 0x117   :  { %v263_v27 = vpop.eup %262 }
 0x118   :  { %v100_v29 = vsel %vm99_vm8, %v261_v19, %v96_v26  ;;  %v79_v31 = vmul.f32 %v263_v27, %v76_v20  ;;  %vm84_vm10 = vweird.f32 %v263_v27 }
 0x119   :  { %v105_v32 = vsel %vm102_vm9, %v104_v28, %v100_v29  ;;  %vm85_vm12 = vmor %vm83_vm11, %vm84_vm10 }
 0x11a   :  { %v108_v33 = vmul.f32 %v105_v32, %v302_v11  ;;  %v80_v35 = vsub.f32 1.0, %v79_v31 }
 0x11c   :  { %v113_v37 = vmul.f32 %v250_v30, %v108_v33  ;;  %v81_v38 = vmul.f32 %v263_v27, %v80_v35 }
 0x11e   :  { %v119_v40 = vadd.f32 %v251_v34, %v113_v37  ;;  %v82_v41 = vadd.f32 %v263_v27, %v81_v38 }
 0x120   :  { %177 = vmatmul.f32.vlgmr.msra.gmra.mxu2 %v119_v40  ;;  %200 = vmatmul.f32.vlgmr.msra.gmra.mxu3 %v119_v40  ;;  %v86_v43 = vsel %vm85_vm12, %v263_v27, %v82_v41 }
 0x121   :  { %v91_v11 = vsel %vm88_vm13, %v90_v42, %v86_v43 }
 0x122   :  { %v107_v44 = vmul.f32 %v91_v11, %v306_v15 }
 0x124   :  { %v112_v45 = vmul.f32 %v250_v30, %v107_v44 }
 0x126   :  { %v118_v46 = vadd.f32 %v251_v34, %v112_v45 }
 0x128   :  { %174 = vmatmul.f32.vlgmr.msra.gmra.mxu0 %v118_v46  ;;  %197 = vmatmul.f32.vlgmr.msra.gmra.mxu1 %v118_v46 }
 0x1a3   :  { %v178_v50 = vpop.f32.mrf.mxu2  ;;  %v201_v51 = vpop.f32.mrf.mxu3 }
 0x1a4   :  { %v179_v52 = vadd.f32 %v178_v50, %v154_v48  ;;  %v202_v53 = vadd.f32 %v201_v51, %v155_v49 }
 0x1a5   :  { %v175_v54 = vpop.f32.mrf.mxu0  ;;  %v198_v55 = vpop.f32.mrf.mxu1 }
 0x1a6   :  { %v206_v56 = vmax.f32 %v179_v52, 0.0  ;;  %v207_v57 = vmax.f32 %v202_v53, 0.0  ;;  %v176_v58 = vadd.f32 %v175_v54, %v154_v48  ;;  %v199_v15 = vadd.f32 %v198_v55, %v155_v49 }
 0x1a8   :  { %210 = vst [vmem:[%s443_s5 + $0x10] sm:$0xff] %v206_v56  ;;  %v204_v59 = vmax.f32 %v176_v58, 0.0  ;;  %v205_v60 = vmax.f32 %v199_v15, 0.0 }
 0x1a9   :  { %211 = vst [vmem:[%s443_s5 + $0x18] sm:$0xff] %v207_v57 }
 0x1aa   :  { %208 = vst [vmem:[%s443_s5] sm:$0xff] %v204_v59 }
 0x1ab   :  { %209 = vst [vmem:[%s443_s5 + $0x8] sm:$0xff] %v205_v60 }

// kernel: encoder_layer.5
= control target key start
LH: loop header
LB: loop body
LE: loop exit
PB: predicated region body
PF: predicated region fallthrough
CT: control target
= control target key end

     0   :  { %10 = vsyncpa [#allocation3], 0  ;;  %s333_s21 = smov [#allocation2]   ;;  %s334_s23 = smov 384   ;;  %s423_s0 = inlined_call_operand.vmem [shape: f32[16,128], index: 0, kind: input, shape index: {}]   ;;  %s424_s1 = inlined_call_operand.vmem [shape: f32[1,128], index: 1, kind: input, shape index: {}]   ;;  %s425_s2 = inlined_call_operand.vmem [shape: f32[1,128], index: 2, kind: input, shape index: {}]   ;;  %s426_s3 = inlined_call_operand.hbm [shape: f32[128,384], index: 3, kind: input, shape index: {}]   ;;  %s427_s4 = inlined_call_operand.vmem [shape: f32[1,384], index: 4, kind: input, shape index: {}]   ;;  %s428_s5 = inlined_call_operand.vmem [shape: f32[16,384], index: 5, kind: output, shape index: {}]  }
   0x1   :  { %s21_s20 = sshll.u32 %s426_s3, 4  ;;  %s23_s22 = sshll.u32 %s333_s21, 4  ;;  %s22_s20 = int_to_ptr.hbm [resolvable:$true] %s21_s20  ;;  %s24_s22 = int_to_ptr.vmem [resolvable:$true] %s23_s22 }
   0x2   :  { %s335_s24 = smov 24  }
   0x3   :  { %29 = dma.hbm_to_vmem [thread:$0]  %s22_s20, 6144, %s24_s22, [#allocation3], %s334_s23, %s334_s23, %s335_s24  }
   0x4   :  { %331 = dma.done.wait [#allocation3], 6144  }
   0x5   :  { %332 = vsyncadd [#allocation3], 4294961152  ;;  %v36_v0 = vld [vmem:[%s423_s0] sm:$0xff]  ;;  %v37_v1 = vld [vmem:[%s423_s0 + $0x8] sm:$0xff]  ;;  %v336_v2 = vmov 128.0   ;;  %v337_v17 = vmov 127.0  }
   0x6   :  { %38 = vadd.xlane.f32.xlu0 %v36_v0  ;;  %295 = vrcp.f32 %v336_v2  ;;  %v181_v20 = vld [vmem:[#allocation2 + $0x168] sm:$0xff]  ;;  %v182_v21 = vld [vmem:[#allocation2 + $0x170] sm:$0xff]  ;;  %v183_v22 = vld [vmem:[#allocation2 + $0x178] sm:$0xff] }
   0x7   :  { %297 = vrcp.f32 %v337_v17  ;;  %192 = vmatpush.msra.mxu0 %v181_v20  ;;  %215 = vmatpush.msra.mxu1 %v182_v21  ;;  %v178_v24 = vld [vmem:[#allocation2 + $0x150] sm:$0xff]  ;;  %v179_v25 = vld [vmem:[#allocation2 + $0x158] sm:$0xff]  ;;  %v180_v26 = vld [vmem:[#allocation2 + $0x160] sm:$0xff] }
   0x8   :  { %238 = vmatpush.msra.mxu2 %v183_v22  ;;  %272 = vmatpush.msra.mxu3 %v181_v20  ;;  %v175_v27 = vld [vmem:[#allocation2 + $0x138] sm:$0xff]  ;;  %v176_v28 = vld [vmem:[#allocation2 + $0x140] sm:$0xff]  ;;  %v177_v29 = vld [vmem:[#allocation2 + $0x148] sm:$0xff] }
   0x9   :  { %193 = vmatpush.msra.mxu0 %v178_v24  ;;  %216 = vmatpush.msra.mxu1 %v179_v25  ;;  %v172_v31 = vld [vmem:[#allocation2 + $0x120] sm:$0xff]  ;;  %v173_v32 = vld [vmem:[#allocation2 + $0x128] sm:$0xff]  ;;  %v174_v33 = vld [vmem:[#allocation2 + $0x130] sm:$0xff] }
   0xa   :  { %239 = vmatpush.msra.mxu2 %v180_v26  ;;  %273 = vmatpush.msra.mxu3 %v178_v24  ;;  %v169_v34 = vld [vmem:[#allocation2 + $0x108] sm:$0xff]  ;;  %v170_v35 = vld [vmem:[#allocation2 + $0x110] sm:$0xff]  ;;  %v171_v36 = vld [vmem:[#allocation2 + $0x118] sm:$0xff] }
   0xb   :  { %194 = vmatpush.msra.mxu0 %v175_v27  ;;  %217 = vmatpush.msra.mxu1 %v176_v28  ;;  %v166_v38 = vld [vmem:[#allocation2 + $0xf0] sm:$0xff]  ;;  %v167_v39 = vld [vmem:[#allocation2 + $0xf8] sm:$0xff]  ;;  %v168_v40 = vld [vmem:[#allocation2 + $0x100] sm:$0xff] }
   0xc   :  { %v296_v3 = vpop.eup %295  ;;  %240 = vmatpush.msra.mxu2 %v177_v29  ;;  %274 = vmatpush.msra.mxu3 %v175_v27  ;;  %v163_v41 = vld [vmem:[#allocation2 + $0xd8] sm:$0xff]  ;;  %v164_v42 = vld [vmem:[#allocation2 + $0xe0] sm:$0xff]  ;;  %v165_v43 = vld [vmem:[#allocation2 + $0xe8] sm:$0xff] }
   0xd   :  { %v43_v4 = vmul.f32 128.0, %v296_v3  ;;  %vm47_vm0 = vweird.f32 %v296_v3  ;;  %v298_v18 = vpop.eup %297  ;;  %195 = vmatpush.msra.mxu0 %v172_v31  ;;  %218 = vmatpush.msra.mxu1 %v173_v32  ;;  %v160_v45 = vld [vmem:[#allocation2 + $0xc0] sm:$0xff]  ;;  %v161_v46 = vld [vmem:[#allocation2 + $0xc8] sm:$0xff]  ;;  %v162_v47 = vld [vmem:[#allocation2 + $0xd0] sm:$0xff] }
   0xe   :  { %40 = vadd.xlane.f32.xlu0 %v37_v1  ;;  %v60_v19 = vmul.f32 127.0, %v298_v18  ;;  %241 = vmatpush.msra.mxu2 %v174_v33  ;;  %vm64_vm1 = vweird.f32 %v298_v18  ;;  %v157_v48 = vld [vmem:[#allocation2 + $0xa8] sm:$0xff]  ;;  %v158_v49 = vld [vmem:[#allocation2 + $0xb0] sm:$0xff]  ;;  %v159_v51 = vld [vmem:[#allocation2 + $0xb8] sm:$0xff] }
   0xf   :  { %v44_v5 = vsub.f32 1.0, %v43_v4  ;;  %275 = vmatpush.msra.mxu3 %v172_v31  ;;  %196 = vmatpush.msra.mxu0 %v169_v34  ;;  %v154_v53 = vld [vmem:[#allocation2 + $0x90] sm:$0xff]  ;;  %v155_v54 = vld [vmem:[#allocation2 + $0x98] sm:$0xff]  ;;  %v156_v55 = vld [vmem:[#allocation2 + $0xa0] sm:$0xff] }
  0x10   :  { %v61_v23 = vsub.f32 1.0, %v60_v19  ;;  %219 = vmatpush.msra.mxu1 %v170_v35  ;;  %242 = vmatpush.msra.mxu2 %v171_v36  ;;  %v151_v56 = vld [vmem:[#allocation2 + $0x78] sm:$0xff]  ;;  %v152_v57 = vld [vmem:[#allocation2 + $0x80] sm:$0xff]  ;;  %v153_v58 = vld [vmem:[#allocation2 + $0x88] sm:$0xff] }
  0x11   :  { %v45_v6 = vmul.f32 %v296_v3, %v44_v5  ;;  %276 = vmatpush.msra.mxu3 %v169_v34  ;;  %197 = vmatpush.msra.mxu0 %v166_v38  ;;  %v148_v59 = vld [vmem:[#allocation2 + $0x60] sm:$0xff]  ;;  %v149_v60 = vld [vmem:[#allocation2 + $0x68] sm:$0xff]  ;;  %v150_v61 = vld [vmem:[#allocation2 + $0x70] sm:$0xff] }
  0x12   :  { %v62_v30 = vmul.f32 %v298_v18, %v61_v23  ;;  %220 = vmatpush.msra.mxu1 %v167_v39  ;;  %243 = vmatpush.msra.mxu2 %v168_v40  ;;  %v145_v62 = vld [vmem:[#allocation2 + $0x48] sm:$0xff]  ;;  %v146_v63 = vld [vmem:[#allocation2 + $0x50] sm:$0xff]  ;;  %v143_v5 = vld [vmem:[#allocation2 + $0x38] sm:$0xff] }
  0x13   :  { %v46_v7 = vadd.f32 %v296_v3, %v45_v6  ;;  %277 = vmatpush.msra.mxu3 %v166_v38  ;;  %198 = vmatpush.msra.mxu0 %v163_v41  ;;  %v142_v4 = vld [vmem:[#allocation2 + $0x30] sm:$0xff] }
  0x14   :  { %v63_v37 = vadd.f32 %v298_v18, %v62_v30  ;;  %221 = vmatpush.msra.mxu1 %v164_v42  ;;  %244 = vmatpush.msra.mxu2 %v165_v43  ;;  %v138_v17 = vld [vmem:[#allocation2 + $0x10] sm:$0xff] }
  0x15   :  { %v48_v8 = vsel %vm47_vm0, %v296_v3, %v46_v7  ;;  %278 = vmatpush.msra.mxu3 %v163_v41  ;;  %199 = vmatpush.msra.mxu0 %v160_v45  ;;  %v144_v7 = vld [vmem:[#allocation2 + $0x40] sm:$0xff] }
  0x16   :  { %v65_v44 = vsel %vm64_vm1, %v298_v18, %v63_v37  ;;  %222 = vmatpush.msra.mxu1 %v161_v46  ;;  %245 = vmatpush.msra.mxu2 %v162_v47  ;;  %v293_v46 = vld [vmem:[%s424_s1] ss:$0 sm:$0xff] }
  0x17   :  { %279 = vmatpush.msra.mxu3 %v160_v45  ;;  %200 = vmatpush.msra.mxu0 %v157_v48 }
  0x18   :  { %223 = vmatpush.msra.mxu1 %v158_v49  ;;  %246 = vmatpush.msra.mxu2 %v159_v51 }
  0x19   :  { %280 = vmatpush.msra.mxu3 %v157_v48  ;;  %201 = vmatpush.msra.mxu0 %v154_v53 }
  0x1a   :  { %224 = vmatpush.msra.mxu1 %v155_v54  ;;  %247 = vmatpush.msra.mxu2 %v156_v55 }
  0x1b   :  { %281 = vmatpush.msra.mxu3 %v154_v53  ;;  %202 = vmatpush.msra.mxu0 %v151_v56 }
  0x1c   :  { %225 = vmatpush.msra.mxu1 %v152_v57  ;;  %248 = vmatpush.msra.mxu2 %v153_v58 }
  0x1d   :  { %282 = vmatpush.msra.mxu3 %v151_v56  ;;  %203 = vmatpush.msra.mxu0 %v148_v59 }
  0x1e   :  { %226 = vmatpush.msra.mxu1 %v149_v60  ;;  %249 = vmatpush.msra.mxu2 %v150_v61 }
  0x1f   :  { %283 = vmatpush.msra.mxu3 %v148_v59  ;;  %204 = vmatpush.msra.mxu0 %v145_v62 }
  0x20   :  { %227 = vmatpush.msra.mxu1 %v146_v63  ;;  %v184_v63 = vld [vmem:[%s427_s4] sm:$0x7] }
  0x21   :  { %284 = vmatpush.msra.mxu3 %v145_v62  ;;  %205 = vmatpush.msra.mxu0 %v142_v4 }
  0x22   :  { %228 = vmatpush.msra.mxu1 %v143_v5 }
  0x23   :  { %285 = vmatpush.msra.mxu3 %v142_v4 }
  0x79   :  { %v39_v9 = vpop.xlane.xlu0 %38 }
  0x7a   :  { %v49_v10 = vmul.f32 %v48_v8, %v39_v9  ;;  %v140_v9 = vld [vmem:[#allocation2 + $0x20] sm:$0xff] }
  0x7b   :  { %229 = vmatpush.msra.mxu1 %v140_v9 }
  0x7c   :  { %v377_v11 = vsub.f32 %v36_v0, %v49_v10 }
  0x7e   :  { %v53_v12 = vmul.f32 %v377_v11, %v377_v11 }
  0x80   :  { %55 = vadd.xlane.f32.xlu1 %v53_v12  ;;  %v141_v12 = vld [vmem:[#allocation2 + $0x28] sm:$0xff] }
  0x81   :  { %v41_v13 = vpop.xlane.xlu0 %40 }
  0x82   :  { %v50_v14 = vmul.f32 %v48_v8, %v41_v13  ;;  %v139_v8 = vld [vmem:[#allocation2 + $0x18] sm:$0xff]  ;;  %v136_v13 = vld [vmem:[#allocation2] sm:$0xff] }
  0x83   :  { %206 = vmatpush.msra.mxu0 %v139_v8  ;;  %286 = vmatpush.msra.mxu3 %v139_v8 }
  0x84   :  { %v381_v15 = vsub.f32 %v37_v1, %v50_v14  ;;  %v147_v1 = vld [vmem:[#allocation2 + $0x58] sm:$0xff]  ;;  %v137_v14 = vld [vmem:[#allocation2 + $0x8] sm:$0xff] }
  0x85   :  { %250 = vmatpush.msra.mxu2 %v147_v1  ;;  %207 = vmatpush.msra.mxu0 %v136_v13  ;;  %v187_v1 = vperm.slane %v184_v63, 1 }
  0x86   :  { %v54_v16 = vmul.f32 %v381_v15, %v381_v15  ;;  %230 = vmatpush.msra.mxu1 %v137_v14  ;;  %287 = vmatpush.msra.mxu3 %v136_v13 }
  0x87   :  { %251 = vmatpush.msra.mxu2 %v144_v7 }
  0x88   :  { %57 = vadd.xlane.f32.xlu1 %v54_v16 }
  0x89   :  { %252 = vmatpush.msra.mxu2 %v141_v12 }
  0x8b   :  { %253 = vmatpush.msra.mxu2 %v138_v17 }
  0xf3   :  { %v56_v50 = vpop.xlane.xlu1 %55 }
  0xf4   :  { %v385_v52 = vmul.f32 %v65_v44, %v56_v50  ;;  %v294_v50 = vld [vmem:[%s425_s2] ss:$0 sm:$0xff] }
  0xf6   :  { %299 = vrsqrt.f32 %v385_v52  ;;  %vm75_vm2 = vcmp.eq.f32.partialorder %v385_v52, inf  ;;  %v78_v24 = vand.u32 2147483648, %v385_v52  ;;  %vm77_vm3 = vcmp.eq.f32.partialorder %v385_v52, 0.0 }
  0xfb   :  { %v58_v0 = vpop.xlane.xlu1 %57 }
  0xfc   :  { %v300_v2 = vpop.eup %299  ;;  %v67_v3 = vmul.f32 %v65_v44, %v58_v0  ;;  %v186_v0 = vperm.slane %v184_v63, 0 }
  0xfd   :  { %v69_v6 = vmul.f32 %v300_v2, %v385_v52 }
  0xfe   :  { %301 = vrsqrt.f32 %v67_v3  ;;  %vm87_vm4 = vcmp.eq.f32.partialorder %v67_v3, inf  ;;  %v90_v32 = vand.u32 2147483648, %v67_v3  ;;  %vm89_vm5 = vcmp.eq.f32.partialorder %v67_v3, 0.0 }
  0xff   :  { %v70_v10 = vmul.f32 %v300_v2, %v69_v6 }
 0x101   :  { %v71_v16 = vmul.f32 0.5, %v70_v10 }
 0x103   :  { %v72_v18 = vsub.f32 1.5, %v71_v16 }
 0x104   :  { %v302_v19 = vpop.eup %301 }
 0x105   :  { %v73_v20 = vmul.f32 %v300_v2, %v72_v18  ;;  %v81_v21 = vmul.f32 %v302_v19, %v67_v3 }
 0x107   :  { %v74_v22 = vmul.f32 %v73_v20, %v385_v52  ;;  %v82_v23 = vmul.f32 %v302_v19, %v81_v21 }
 0x109   :  { %v76_v25 = vsel %vm75_vm2, %v385_v52, %v74_v22  ;;  %v83_v26 = vmul.f32 0.5, %v82_v23 }
 0x10a   :  { %v79_v27 = vsel %vm77_vm3, %v78_v24, %v76_v25 }
 0x10b   :  { %v84_v28 = vsub.f32 1.5, %v83_v26  ;;  %v92_v29 = vadd.f32 1e-06, %v79_v27 }
 0x10d   :  { %v85_v30 = vmul.f32 %v302_v19, %v84_v28  ;;  %303 = vrcp.f32 %v92_v29  ;;  %v105_v39 = vand.u32 2147483648, %v92_v29  ;;  %v103_v41 = vand.u32 2147483647, %v92_v29 }
 0x10e   :  { %vm99_vm7 = vweird.f32 %v92_v29 }
 0x10f   :  { %v86_v31 = vmul.f32 %v85_v30, %v67_v3  ;;  %v106_v44 = vor.u32 1.1754944e-38, %v105_v39  ;;  %vm104_vm9 = vcmp.eq.f32.partialorder %v103_v41, 8.507059e+37 }
 0x111   :  { %v88_v33 = vsel %vm87_vm4, %v67_v3, %v86_v31 }
 0x112   :  { %v91_v34 = vsel %vm89_vm5, %v90_v32, %v88_v33 }
 0x113   :  { %v304_v35 = vpop.eup %303  ;;  %v93_v36 = vadd.f32 1e-06, %v91_v34 }
 0x114   :  { %v95_v37 = vmul.f32 %v304_v35, %v92_v29  ;;  %vm100_vm6 = vweird.f32 %v304_v35 }
 0x115   :  { %305 = vrcp.f32 %v93_v36  ;;  %vm101_vm8 = vmor %vm99_vm7, %vm100_vm6  ;;  %v119_v52 = vand.u32 2147483648, %v93_v36  ;;  %v117_v55 = vand.u32 2147483647, %v93_v36  ;;  %vm113_vm11 = vweird.f32 %v93_v36 }
 0x116   :  { %v96_v38 = vsub.f32 1.0, %v95_v37 }
 0x117   :  { %v120_v58 = vor.u32 1.1754944e-38, %v119_v52  ;;  %vm118_vm13 = vcmp.eq.f32.partialorder %v117_v55, 8.507059e+37 }
 0x118   :  { %v97_v40 = vmul.f32 %v304_v35, %v96_v38 }
 0x11a   :  { %v98_v42 = vadd.f32 %v304_v35, %v97_v40 }
 0x11b   :  { %v306_v43 = vpop.eup %305 }
 0x11c   :  { %v102_v45 = vsel %vm101_vm8, %v304_v35, %v98_v42  ;;  %v109_v47 = vmul.f32 %v306_v43, %v93_v36  ;;  %vm114_vm10 = vweird.f32 %v306_v43 }
 0x11d   :  { %v107_v48 = vsel %vm104_vm9, %v106_v44, %v102_v45  ;;  %vm115_vm12 = vmor %vm113_vm11, %vm114_vm10 }
 0x11e   :  { %v123_v49 = vmul.f32 %v107_v48, %v377_v11  ;;  %v110_v51 = vsub.f32 1.0, %v109_v47 }
 0x120   :  { %v128_v53 = vmul.f32 %v293_v46, %v123_v49  ;;  %v111_v54 = vmul.f32 %v306_v43, %v110_v51 }
 0x122   :  { %v134_v56 = vadd.f32 %v294_v50, %v128_v53  ;;  %v112_v57 = vadd.f32 %v306_v43, %v111_v54 }
 0x124   :  { %208 = vmatmul.f32.vlgmr.msra.gmra.mxu0 %v134_v56  ;;  %231 = vmatmul.f32.vlgmr.msra.gmra.mxu1 %v134_v56  ;;  %v116_v59 = vsel %vm115_vm12, %v306_v43, %v112_v57 }
 0x125   :  { %254 = vmatmul.f32.vlgmr.msra.gmra.mxu2 %v134_v56  ;;  %v121_v11 = vsel %vm118_vm13, %v120_v58, %v116_v59 }
 0x126   :  { %v124_v60 = vmul.f32 %v121_v11, %v381_v15  ;;  %v188_v15 = vperm.slane %v184_v63, 2 }
 0x128   :  { %v129_v61 = vmul.f32 %v293_v46, %v124_v60 }
 0x12a   :  { %v135_v62 = vadd.f32 %v294_v50, %v129_v61 }
 0x12c   :  { %211 = vmatmul.f32.vlgmr.msra.gmra.mxu3 %v135_v62  ;;  %234 = vmatmul.f32.gmra.mxu1 %v135_v62 }
 0x12d   :  { %257 = vmatmul.f32.gmra.mxu2 %v135_v62 }
 0x1a1   :  { %v209_v2 = vpop.f32.mrf.mxu0  ;;  %v232_v3 = vpop.f32.mrf.mxu1 }
 0x1a2   :  { %v210_v4 = vadd.f32 %v209_v2, %v186_v0  ;;  %v233_v5 = vadd.f32 %v232_v3, %v187_v1 }
 0x1a4   :  { %261 = vst [vmem:[%s428_s5] sm:$0xff] %v210_v4 }
 0x1a5   :  { %262 = vst [vmem:[%s428_s5 + $0x8] sm:$0xff] %v233_v5 }
 0x1a8   :  { %v255_v6 = vpop.f32.mrf.mxu2 }
 0x1a9   :  { %v256_v7 = vadd.f32 %v255_v6, %v188_v15  ;;  %v235_v8 = vpop.f32.mrf.mxu1 }
 0x1aa   :  { %v236_v9 = vadd.f32 %v235_v8, %v187_v1 }
 0x1ab   :  { %263 = vst [vmem:[%s428_s5 + $0x10] sm:$0xff] %v256_v7 }
 0x1ac   :  { %265 = vst [vmem:[%s428_s5 + $0x20] sm:$0xff] %v236_v9 }
 0x1af   :  { %v212_v10 = vpop.f32.mrf.mxu3 }
 0x1b0   :  { %v213_v12 = vadd.f32 %v212_v10, %v186_v0  ;;  %v258_v13 = vpop.f32.mrf.mxu2 }
 0x1b1   :  { %v259_v14 = vadd.f32 %v258_v13, %v188_v15 }
 0x1b2   :  { %264 = vst [vmem:[%s428_s5 + $0x18] sm:$0xff] %v213_v12 }
 0x1b3   :  { %266 = vst [vmem:[%s428_s5 + $0x28] sm:$0xff] %v259_v14 }
 0x1b4   :  { %271 = vsyncpa [#allocation3], 1 }

// kernel: encoder_layer.9
= control target key start
LH: loop header
LB: loop body
LE: loop exit
PB: predicated region body
PF: predicated region fallthrough
CT: control target
= control target key end

     0   :  { %s294_s1 = inlined_call_operand.vmem [shape: f32[256,128], index: 1, kind: input, shape index: {}]   ;;  %s295_s2 = inlined_call_operand.vmem [shape: f32[1,128], index: 2, kind: input, shape index: {}]   ;;  %s296_s0 = inlined_call_operand.vmem [shape: f32[16,256], index: 0, kind: input, shape index: {}]   ;;  %s297_s3 = inlined_call_operand.vmem [shape: f32[16,128], index: 3, kind: input, shape index: {}, may-alias: {3,4}]   ;;  %s298_s4 = inlined_call_operand.vmem [shape: f32[16,128], index: 4, kind: output, shape index: {}, may-alias: {3,4}]  }
   0x1   :  { %v36_v0 = vld [vmem:[%s294_s1 + $0x78] sm:$0xff]  ;;  %v35_v1 = vld [vmem:[%s294_s1 + $0x70] sm:$0xff]  ;;  %v34_v4 = vld [vmem:[%s294_s1 + $0x68] sm:$0xff] }
   0x2   :  { %v52_v2 = vld [vmem:[%s294_s1 + $0xf8] sm:$0xff]  ;;  %113 = vmatpush.msra.mxu2 %v36_v0  ;;  %v51_v3 = vld [vmem:[%s294_s1 + $0xf0] sm:$0xff]  ;;  %57 = vmatpush.msra.mxu0 %v36_v0  ;;  %v50_v5 = vld [vmem:[%s294_s1 + $0xe8] sm:$0xff] }
   0x3   :  { %129 = vmatpush.msra.mxu3 %v52_v2  ;;  %80 = vmatpush.msra.mxu1 %v52_v2  ;;  %v33_v6 = vld [vmem:[%s294_s1 + $0x60] sm:$0xff]  ;;  %v32_v8 = vld [vmem:[%s294_s1 + $0x58] sm:$0xff]  ;;  %v31_v10 = vld [vmem:[%s294_s1 + $0x50] sm:$0xff] }
   0x4   :  { %114 = vmatpush.msra.mxu2 %v35_v1  ;;  %58 = vmatpush.msra.mxu0 %v35_v1  ;;  %v49_v7 = vld [vmem:[%s294_s1 + $0xe0] sm:$0xff]  ;;  %v48_v9 = vld [vmem:[%s294_s1 + $0xd8] sm:$0xff]  ;;  %v47_v11 = vld [vmem:[%s294_s1 + $0xd0] sm:$0xff] }
   0x5   :  { %130 = vmatpush.msra.mxu3 %v51_v3  ;;  %81 = vmatpush.msra.mxu1 %v51_v3  ;;  %v30_v12 = vld [vmem:[%s294_s1 + $0x48] sm:$0xff]  ;;  %v29_v14 = vld [vmem:[%s294_s1 + $0x40] sm:$0xff]  ;;  %v28_v16 = vld [vmem:[%s294_s1 + $0x38] sm:$0xff] }
   0x6   :  { %115 = vmatpush.msra.mxu2 %v34_v4  ;;  %59 = vmatpush.msra.mxu0 %v34_v4  ;;  %v46_v13 = vld [vmem:[%s294_s1 + $0xc8] sm:$0xff]  ;;  %v45_v15 = vld [vmem:[%s294_s1 + $0xc0] sm:$0xff]  ;;  %v44_v17 = vld [vmem:[%s294_s1 + $0xb8] sm:$0xff] }
   0x7   :  { %131 = vmatpush.msra.mxu3 %v50_v5  ;;  %82 = vmatpush.msra.mxu1 %v50_v5  ;;  %v27_v18 = vld [vmem:[%s294_s1 + $0x30] sm:$0xff]  ;;  %v26_v20 = vld [vmem:[%s294_s1 + $0x28] sm:$0xff]  ;;  %v25_v22 = vld [vmem:[%s294_s1 + $0x20] sm:$0xff] }
   0x8   :  { %116 = vmatpush.msra.mxu2 %v33_v6  ;;  %60 = vmatpush.msra.mxu0 %v33_v6  ;;  %v43_v19 = vld [vmem:[%s294_s1 + $0xb0] sm:$0xff]  ;;  %v42_v21 = vld [vmem:[%s294_s1 + $0xa8] sm:$0xff]  ;;  %v41_v23 = vld [vmem:[%s294_s1 + $0xa0] sm:$0xff] }
   0x9   :  { %132 = vmatpush.msra.mxu3 %v49_v7  ;;  %83 = vmatpush.msra.mxu1 %v49_v7  ;;  %v24_v24 = vld [vmem:[%s294_s1 + $0x18] sm:$0xff]  ;;  %v23_v26 = vld [vmem:[%s294_s1 + $0x10] sm:$0xff]  ;;  %v22_v28 = vld [vmem:[%s294_s1 + $0x8] sm:$0xff] }
   0xa   :  { %117 = vmatpush.msra.mxu2 %v32_v8  ;;  %61 = vmatpush.msra.mxu0 %v32_v8  ;;  %v40_v25 = vld [vmem:[%s294_s1 + $0x98] sm:$0xff]  ;;  %v39_v27 = vld [vmem:[%s294_s1 + $0x90] sm:$0xff]  ;;  %v38_v29 = vld [vmem:[%s294_s1 + $0x88] sm:$0xff] }
   0xb   :  { %133 = vmatpush.msra.mxu3 %v48_v9  ;;  %84 = vmatpush.msra.mxu1 %v48_v9  ;;  %v21_v30 = vld [vmem:[%s294_s1] sm:$0xff]  ;;  %v19_v32 = vld [vmem:[%s296_s0 + $0x10] sm:$0xff]  ;;  %v20_v33 = vld [vmem:[%s296_s0 + $0x18] sm:$0xff] }
   0xc   :  { %118 = vmatpush.msra.mxu2 %v31_v10  ;;  %62 = vmatpush.msra.mxu0 %v31_v10  ;;  %v37_v31 = vld [vmem:[%s294_s1 + $0x80] sm:$0xff]  ;;  %v18_v35 = vld [vmem:[%s296_s0 + $0x8] sm:$0xff] }
   0xd   :  { %134 = vmatpush.msra.mxu3 %v47_v11  ;;  %85 = vmatpush.msra.mxu1 %v47_v11  ;;  %v17_v34 = vld [vmem:[%s296_s0] sm:$0xff]  ;;  %v104_v46 = vld [vmem:[%s297_s3 + $0x8] sm:$0xff] }
   0xe   :  { %119 = vmatpush.msra.mxu2 %v30_v12  ;;  %63 = vmatpush.msra.mxu0 %v30_v12  ;;  %v145_v36 = vld [vmem:[%s295_s2] ss:$0 sm:$0xff] }
   0xf   :  { %135 = vmatpush.msra.mxu3 %v46_v13  ;;  %86 = vmatpush.msra.mxu1 %v46_v13  ;;  %v103_v40 = vld [vmem:[%s297_s3] sm:$0xff] }
  0x10   :  { %120 = vmatpush.msra.mxu2 %v29_v14  ;;  %64 = vmatpush.msra.mxu0 %v29_v14 }
  0x11   :  { %136 = vmatpush.msra.mxu3 %v45_v15  ;;  %87 = vmatpush.msra.mxu1 %v45_v15 }
  0x12   :  { %121 = vmatpush.msra.mxu2 %v28_v16  ;;  %65 = vmatpush.msra.mxu0 %v28_v16 }
  0x13   :  { %137 = vmatpush.msra.mxu3 %v44_v17  ;;  %88 = vmatpush.msra.mxu1 %v44_v17 }
  0x14   :  { %122 = vmatpush.msra.mxu2 %v27_v18  ;;  %66 = vmatpush.msra.mxu0 %v27_v18 }
  0x15   :  { %138 = vmatpush.msra.mxu3 %v43_v19  ;;  %89 = vmatpush.msra.mxu1 %v43_v19 }
  0x16   :  { %123 = vmatpush.msra.mxu2 %v26_v20  ;;  %67 = vmatpush.msra.mxu0 %v26_v20 }
  0x17   :  { %139 = vmatpush.msra.mxu3 %v42_v21  ;;  %90 = vmatpush.msra.mxu1 %v42_v21 }
  0x18   :  { %124 = vmatpush.msra.mxu2 %v25_v22  ;;  %68 = vmatpush.msra.mxu0 %v25_v22 }
  0x19   :  { %140 = vmatpush.msra.mxu3 %v41_v23  ;;  %91 = vmatpush.msra.mxu1 %v41_v23 }
  0x1a   :  { %125 = vmatpush.msra.mxu2 %v24_v24  ;;  %69 = vmatpush.msra.mxu0 %v24_v24 }
  0x1b   :  { %141 = vmatpush.msra.mxu3 %v40_v25  ;;  %92 = vmatpush.msra.mxu1 %v40_v25 }
  0x1c   :  { %126 = vmatpush.msra.mxu2 %v23_v26  ;;  %70 = vmatpush.msra.mxu0 %v23_v26 }
  0x1d   :  { %142 = vmatpush.msra.mxu3 %v39_v27  ;;  %93 = vmatpush.msra.mxu1 %v39_v27 }
  0x1e   :  { %127 = vmatpush.msra.mxu2 %v22_v28  ;;  %71 = vmatpush.msra.mxu0 %v22_v28 }
  0x1f   :  { %143 = vmatpush.msra.mxu3 %v38_v29  ;;  %94 = vmatpush.msra.mxu1 %v38_v29 }
  0x20   :  { %128 = vmatpush.msra.mxu2 %v21_v30  ;;  %72 = vmatpush.msra.mxu0 %v21_v30 }
  0x21   :  { %144 = vmatpush.msra.mxu3 %v37_v31  ;;  %76 = vmatmul.f32.vlgmr.msra.gmra.mxu2 %v19_v32 }
  0x22   :  { %99 = vmatmul.f32.vlgmr.msra.gmra.mxu3 %v20_v33  ;;  %95 = vmatpush.msra.mxu1 %v37_v31 }
  0x23   :  { %73 = vmatmul.f32.vlgmr.msra.gmra.mxu0 %v17_v34  ;;  %96 = vmatmul.f32.vlgmr.msra.gmra.mxu1 %v18_v35 }
  0xa0   :  { %v74_v37 = vpop.f32.mrf.mxu0  ;;  %v97_v38 = vpop.f32.mrf.mxu1 }
  0xa1   :  { %v75_v39 = vadd.f32 %v145_v36, %v74_v37 }
  0xa3   :  { %v98_v41 = vadd.f32 %v97_v38, %v75_v39 }
  0xa4   :  { %v77_v42 = vpop.f32.mrf.mxu2 }
  0xa5   :  { %v100_v43 = vpop.f32.mrf.mxu3  ;;  %v78_v44 = vadd.f32 %v145_v36, %v77_v42  ;;  %v105_v45 = vadd.f32 %v103_v40, %v98_v41 }
  0xa7   :  { %107 = vst [vmem:[%s298_s4] sm:$0xff] %v105_v45  ;;  %v101_v47 = vadd.f32 %v100_v43, %v78_v44 }
  0xa9   :  { %v106_v48 = vadd.f32 %v104_v46, %v101_v47 }
  0xab   :  { %108 = vst [vmem:[%s298_s4 + $0x8] sm:$0xff] %v106_v48 }

</bundles_post_ra>
